<compile_context>
chip_gen: v7x
topology: tpu7x:2x2x1
jax: 0.10.0
libtpu: 0.0.40
codegen_flags: <defaults>
</compile_context>

<pallas_src>
import numpy as np
import jax
import jax.numpy as jnp
from jax import lax
from jax.experimental import pallas as pl
from jax.experimental.pallas import tpu as pltpu

NUM_CLA = 1000  # unused in forward; kept for parity with the PyTorch module


# ---------------------------------------------------------------------------
# Pallas kernel: whole block forward (bn1+relu, shortcut_x, conv1, bn2+relu,
# conv2, shortcut_l/ll, ZeroS linear combination) for one batch image per
# grid step.  All contractions are MXU dots in lane-dense (H, W*C) layout.
# ---------------------------------------------------------------------------
def zeros_block_kernel(
    ab_ref,          # VMEM (1, 2)              [a_0, a_1]
    x_ref,           # VMEM (1, H, W*Cin)       input image slab
    lr_ref,          # VMEM (1, H, W*Clr)       last_res slab
    llr_ref,         # VMEM (1, H, W*Cllr)      l_last_res slab
    s1_ref, b1_ref,  # VMEM (1, W*Cin)          fused bn1 scale/bias (tiled over W)
    s2_ref, b2_ref,  # VMEM (1, W*P)            fused bn2 scale/bias (tiled over W)
    w1_ref,          # VMEM (3, W*Cin, W*P)     conv1 banded weights (per kernel row)
    w2_ref,          # VMEM (3, W*P,  W*P)      conv2 banded weights (pre-scaled by stepsize*b_0)
    wsx_ref,         # VMEM (W*Cin,  W*P)       shortcut_x 1x1 (block-diagonal)
    wsl_ref,         # VMEM (W*Clr,  W*P)       shortcut_l 1x1 (block-diagonal)
    wsll_ref,        # VMEM (W*Cllr, W*P)       shortcut_ll 1x1 (block-diag, pre-scaled by a_2)
    xout_ref, res_ref, lrout_ref,   # VMEM outputs (1, H, W*P)
    fp_ref,          # scratch VMEM (H+2, W*Cin)  row-zero-padded relu(bn1(x))
    gp_ref,          # scratch VMEM (H+2, W*P)    row-zero-padded relu(bn2(conv1))
):
    H = x_ref.shape[1]

    # bn1 + relu (eval-mode BN folded to scale/bias)
    f = jnp.maximum(x_ref[0] * s1_ref[...] + b1_ref[...], 0.0)          # (H, W*Cin)

    # residual = shortcut_x(F_x_n): 1x1 conv == block-diagonal MXU matmul
    residual = jnp.dot(f, wsx_ref[...], preferred_element_type=jnp.float32)   # (H, W*P)

    # conv1 (3x3, pad 1): zero-row-pad f into scratch; left/right zero padding is
    # implicit in the banded weight matrices.  One MXU dot per kernel row (dy).
    fp_ref[...] = jnp.zeros_like(fp_ref)
    fp_ref[1:H + 1, :] = f
    c1 = jnp.dot(fp_ref[0:H, :], w1_ref[0], preferred_element_type=jnp.float32)
    c1 = c1 + jnp.dot(fp_ref[1:H + 1, :], w1_ref[1], preferred_element_type=jnp.float32)
    c1 = c1 + jnp.dot(fp_ref[2:H + 2, :], w1_ref[2], preferred_element_type=jnp.float32)

    # bn2 + relu
    g = jnp.maximum(c1 * s2_ref[...] + b2_ref[...], 0.0)                # (H, W*P)

    # conv2 (3x3, pad 1); weights already carry the stepsize*b_0 factor
    gp_ref[...] = jnp.zeros_like(gp_ref)
    gp_ref[1:H + 1, :] = g
    f2 = jnp.dot(gp_ref[0:H, :], w2_ref[0], preferred_element_type=jnp.float32)
    f2 = f2 + jnp.dot(gp_ref[1:H + 1, :], w2_ref[1], preferred_element_type=jnp.float32)
    f2 = f2 + jnp.dot(gp_ref[2:H + 2, :], w2_ref[2], preferred_element_type=jnp.float32)

    # 1x1 shortcuts on last_res / l_last_res (shortcut_ll pre-scaled by a_2)
    lrp = jnp.dot(lr_ref[0], wsl_ref[...], preferred_element_type=jnp.float32)
    llrp = jnp.dot(llr_ref[0], wsll_ref[...], preferred_element_type=jnp.float32)

    a0 = ab_ref[0:1, 0:1]
    a1 = ab_ref[0:1, 1:2]

    # x = stepsize*b_0*F + a_0*residual + a_1*shortcut_l(last_res) + a_2*shortcut_ll(l_last_res)
    xout_ref[0] = f2 + a0 * residual + a1 * lrp + llrp
    res_ref[0] = residual          # new last_res
    lrout_ref[0] = lrp             # new l_last_res (= shortcut_l(last_res_in))


# ---------------------------------------------------------------------------
# Parameter init, host-side weight transforms, pallas_call wrapper, reference.
# ---------------------------------------------------------------------------
def init_params(key, in_planes, planes, last_res_planes, l_last_res_planes,
                k_ini=-9.0 / 5):
    ks = jax.random.split(key, 13)
    p = {}
    p['bn1_gamma'] = jax.random.uniform(ks[0], (in_planes,), jnp.float32, 0.5, 1.5)
    p['bn1_beta'] = 0.1 * jax.random.normal(ks[1], (in_planes,), jnp.float32)
    p['bn1_mean'] = 0.1 * jax.random.normal(ks[2], (in_planes,), jnp.float32)
    p['bn1_var'] = jax.random.uniform(ks[3], (in_planes,), jnp.float32, 0.5, 1.5)
    p['conv1_w'] = 0.2 * jax.random.normal(ks[4], (planes, in_planes, 3, 3), jnp.float32)
    p['bn2_gamma'] = jax.random.uniform(ks[5], (planes,), jnp.float32, 0.5, 1.5)
    p['bn2_beta'] = 0.1 * jax.random.normal(ks[6], (planes,), jnp.float32)
    p['bn2_mean'] = 0.1 * jax.random.normal(ks[7], (planes,), jnp.float32)
    p['bn2_var'] = jax.random.uniform(ks[8], (planes,), jnp.float32, 0.5, 1.5)
    p['conv2_w'] = 0.2 * jax.random.normal(ks[9], (planes, planes, 3, 3), jnp.float32)
    p['shortcut_x_w'] = 0.2 * jax.random.normal(ks[10], (planes, in_planes, 1, 1), jnp.float32)
    p['shortcut_l_w'] = 0.2 * jax.random.normal(ks[11], (planes, last_res_planes, 1, 1), jnp.float32)
    p['shortcut_ll_w'] = 0.2 * jax.random.normal(ks[12], (planes, l_last_res_planes, 1, 1), jnp.float32)
    # nn.Parameter(torch.Tensor(1).uniform_(k_ini, k_ini)) == constant k_ini
    p['k'] = jnp.float32(k_ini)
    return p


def _fold_bn(gamma, beta, mean, var, eps=1e-5):
    s = gamma / jnp.sqrt(var + eps)
    b = beta - mean * s
    return s, b


def _coeffs(k, stepsize):
    b0 = (3.0 * k - 1.0) / (k * 2.0)
    a0 = (3.0 * k + 3.0) / (k * 4.0)
    a1 = -1.0 / k
    a2 = (k + 1.0) / (4.0 * k)
    return jnp.stack([jnp.float32(stepsize) * b0, a0, a1, a2]).astype(jnp.float32)


def _converted(params):
    s1, b1 = _fold_bn(params['bn1_gamma'], params['bn1_beta'],
                      params['bn1_mean'], params['bn1_var'])
    s2, b2 = _fold_bn(params['bn2_gamma'], params['bn2_beta'],
                      params['bn2_mean'], params['bn2_var'])
    w1 = jnp.transpose(params['conv1_w'], (2, 3, 1, 0))   # HWIO
    w2 = jnp.transpose(params['conv2_w'], (2, 3, 1, 0))
    wsx = params['shortcut_x_w'][:, :, 0, 0].T            # (Cin, P)
    wsl = params['shortcut_l_w'][:, :, 0, 0].T
    wsll = params['shortcut_ll_w'][:, :, 0, 0].T
    return s1, b1, s2, b2, w1, w2, wsx, wsl, wsll


def _banded_conv_weights(w_hwio, W):
    """(kh,kw,Cin,P) HWIO -> (kh, W*Cin, W*P) banded matmul weights, one per kernel row.

    M[dy][wi*Cin + c, wo*P + o] = w_hwio[dy, wi - wo + 1, c, o] inside the band,
    0 outside, so `row_window(dy) @ M[dy]` realizes the 3x3 conv's column taps
    including the left/right zero padding of the image border.
    """
    kh, kw, cin, cout = w_hwio.shape
    dx = jnp.arange(kw)[:, None, None]
    wi = jnp.arange(W)[None, :, None]      # input column block
    wo = jnp.arange(W)[None, None, :]      # output column block
    ind = (wi == wo + dx - (kw // 2)).astype(jnp.float32)          # (kw, W, W)
    m = jnp.einsum('xiw,yxco->yicwo', ind, w_hwio)                 # (kh, W, cin, W, cout)
    return m.reshape(kh, W * cin, W * cout)


def _block_diag_1x1(wc, W):
    """(Cin, P) 1x1-conv weight -> (W*Cin, W*P) block-diagonal matmul weight."""
    return jnp.kron(jnp.eye(W, dtype=jnp.float32), wc)


def zeros_block_in_forward(inp, params, stepsize=1.0):
    """Pallas forward. inp = [x, last_res, l_last_res] in NCHW (PyTorch convention)."""
    x, last_res, l_last_res = inp
    N, Cin, H, W = x.shape
    P = params['conv1_w'].shape[0]
    Clr = last_res.shape[1]
    Cllr = l_last_res.shape[1]

    # NCHW -> NHWC -> lane-dense (N, H, W*C) slabs
    x2 = jnp.transpose(x, (0, 2, 3, 1)).reshape(N, H, W * Cin)
    lr2 = jnp.transpose(last_res, (0, 2, 3, 1)).reshape(N, H, W * Clr)
    llr2 = jnp.transpose(l_last_res, (0, 2, 3, 1)).reshape(N, H, W * Cllr)

    s1, b1, s2, b2, w1, w2, wsx, wsl, wsll = _converted(params)
    coef = _coeffs(params['k'], stepsize)          # [stepsize*b0, a0, a1, a2]

    w1b = _banded_conv_weights(w1, W)                       # (3, W*Cin, W*P)
    w2b = _banded_conv_weights(w2, W) * coef[0]             # fold stepsize*b_0 into conv2
    wsxb = _block_diag_1x1(wsx, W)                          # (W*Cin,  W*P)
    wslb = _block_diag_1x1(wsl, W)                          # (W*Clr,  W*P)
    wsllb = _block_diag_1x1(wsll, W) * coef[3]              # fold a_2 into shortcut_ll

    s1r = jnp.tile(s1, W).reshape(1, W * Cin)
    b1r = jnp.tile(b1, W).reshape(1, W * Cin)
    s2r = jnp.tile(s2, W).reshape(1, W * P)
    b2r = jnp.tile(b2, W).reshape(1, W * P)
    ab = coef[1:3].reshape(1, 2).astype(jnp.float32)        # [a_0, a_1]

    out_sds = jax.ShapeDtypeStruct((N, H, W * P), jnp.float32)

    def batch_spec(c):
        return pl.BlockSpec((1, H, W * c), lambda n: (n, 0, 0))

    def full2(r, c):
        return pl.BlockSpec((r, c), lambda n: (0, 0))

    def full3(a, r, c):
        return pl.BlockSpec((a, r, c), lambda n: (0, 0, 0))

    xout, res, lrout = pl.pallas_call(
        zeros_block_kernel,
        out_shape=(out_sds, out_sds, out_sds),
        grid=(N,),
        in_specs=[
            full2(1, 2),                 # [a0, a1]
            batch_spec(Cin),             # x
            batch_spec(Clr),             # last_res
            batch_spec(Cllr),            # l_last_res
            full2(1, W * Cin),           # bn1 scale
            full2(1, W * Cin),           # bn1 bias
            full2(1, W * P),             # bn2 scale
            full2(1, W * P),             # bn2 bias
            full3(3, W * Cin, W * P),    # conv1 banded weights
            full3(3, W * P, W * P),      # conv2 banded weights (pre-scaled)
            full2(W * Cin, W * P),       # shortcut_x
            full2(W * Clr, W * P),       # shortcut_l
            full2(W * Cllr, W * P),      # shortcut_ll (pre-scaled)
        ],
        out_specs=(
            pl.BlockSpec((1, H, W * P), lambda n: (n, 0, 0)),
            pl.BlockSpec((1, H, W * P), lambda n: (n, 0, 0)),
            pl.BlockSpec((1, H, W * P), lambda n: (n, 0, 0)),
        ),
        scratch_shapes=[
            pltpu.VMEM((H + 2, W * Cin), jnp.float32),
            pltpu.VMEM((H + 2, W * P), jnp.float32),
        ],
        compiler_params=pltpu.CompilerParams(
            dimension_semantics=("parallel",),
            vmem_limit_bytes=32 * 1024 * 1024,
        ),
    )(ab, x2, lr2, llr2, s1r, b1r, s2r, b2r, w1b, w2b, wsxb, wslb, wsllb)

    def to_nchw(t):
        return jnp.transpose(t.reshape(N, H, W, P), (0, 3, 1, 2))

    # out = [x, last_res, l_last_res, k]  (last_res := residual,
    #        l_last_res := shortcut_l(last_res_in))
    return [to_nchw(xout), to_nchw(res), to_nchw(lrout), params['k']]


def reference_forward(inp, params, stepsize=1.0):
    """Pure-JAX reference (lax.conv), NCHW interface like the PyTorch module."""
    x, last_res, l_last_res = inp
    x = jnp.transpose(x, (0, 2, 3, 1))
    lr = jnp.transpose(last_res, (0, 2, 3, 1))
    llr = jnp.transpose(l_last_res, (0, 2, 3, 1))
    s1, b1, s2, b2, w1, w2, wsx, wsl, wsll = _converted(params)
    coef = _coeffs(params['k'], stepsize)
    dn = ('NHWC', 'HWIO', 'NHWC')

    f = jnp.maximum(x * s1 + b1, 0.0)
    residual = jnp.einsum('nhwc,co->nhwo', f, wsx)
    c1 = lax.conv_general_dilated(f, w1, (1, 1), 'SAME', dimension_numbers=dn)
    g = jnp.maximum(c1 * s2 + b2, 0.0)
    f2 = lax.conv_general_dilated(g, w2, (1, 1), 'SAME', dimension_numbers=dn)
    lrp = jnp.einsum('nhwc,co->nhwo', lr, wsl)
    llrp = jnp.einsum('nhwc,co->nhwo', llr, wsll)
    xout = coef[0] * f2 + coef[1] * residual + coef[2] * lrp + coef[3] * llrp
    to_nchw = lambda t: jnp.transpose(t, (0, 3, 1, 2))
    return [to_nchw(xout), to_nchw(residual), to_nchw(lrp), params['k']]


if __name__ == "__main__":
    key = jax.random.PRNGKey(0)
    in_planes, planes = 4, 8
    last_res_planes, l_last_res_planes = 6, 6
    N, H, W = 2, 16, 16   # W * planes == 128 -> lane-dense output stores

    k_param, k_x, k_lr, k_llr = jax.random.split(key, 4)
    params = init_params(k_param, in_planes, planes,
                         last_res_planes, l_last_res_planes)

    x = jax.random.normal(k_x, (N, in_planes, H, W), jnp.float32)
    last_res = jax.random.normal(k_lr, (N, last_res_planes, H, W), jnp.float32)
    l_last_res = jax.random.normal(k_llr, (N, l_last_res_planes, H, W), jnp.float32)

    out = zeros_block_in_forward([x, last_res, l_last_res], params)
    out = jax.block_until_ready(out)

    ref = reference_forward([x, last_res, l_last_res], params)
    for o, r in zip(out[:3], ref[:3]):
        np.testing.assert_allclose(np.asarray(o), np.asarray(r),
                                   rtol=1e-3, atol=1e-3)

    print("KERNEL_OK")
</pallas_src>

<mosaic_0001>
module attributes {stable_mosaic.version = 11 : i64} {
  func.func @zeros_block_kernel(%arg0: i32, %arg1: memref<1x2xf32, #tpu.memory_space<vmem>>, %arg2: memref<1x16x64xf32, #tpu.memory_space<vmem>>, %arg3: memref<1x16x96xf32, #tpu.memory_space<vmem>>, %arg4: memref<1x16x96xf32, #tpu.memory_space<vmem>>, %arg5: memref<1x64xf32, #tpu.memory_space<vmem>>, %arg6: memref<1x64xf32, #tpu.memory_space<vmem>>, %arg7: memref<1x128xf32, #tpu.memory_space<vmem>>, %arg8: memref<1x128xf32, #tpu.memory_space<vmem>>, %arg9: memref<3x64x128xf32, #tpu.memory_space<vmem>>, %arg10: memref<3x128x128xf32, #tpu.memory_space<vmem>>, %arg11: memref<64x128xf32, #tpu.memory_space<vmem>>, %arg12: memref<96x128xf32, #tpu.memory_space<vmem>>, %arg13: memref<96x128xf32, #tpu.memory_space<vmem>>, %arg14: memref<1x16x128xf32, #tpu.memory_space<vmem>>, %arg15: memref<1x16x128xf32, #tpu.memory_space<vmem>>, %arg16: memref<1x16x128xf32, #tpu.memory_space<vmem>>, %arg17: memref<18x64xf32, #tpu.memory_space<vmem>>, %arg18: memref<18x128xf32, #tpu.memory_space<vmem>>) attributes {dimension_semantics = [#tpu.dimension_semantics<parallel>], iteration_bounds = array<i64: 2>, scalar_prefetch = 0 : i64, scratch_operands = 2 : i64, tpu.core_type = #tpu.core_type<tc>, window_params = [{pipeline_mode = #tpu.pipeline_mode<synchronous>, transform_indices = @transform_0, window_bounds = array<i64: 1, 2>}, {transform_indices = @transform_1, window_bounds = array<i64: 1, 16, 64>}, {transform_indices = @transform_2, window_bounds = array<i64: 1, 16, 96>}, {transform_indices = @transform_3, window_bounds = array<i64: 1, 16, 96>}, {pipeline_mode = #tpu.pipeline_mode<synchronous>, transform_indices = @transform_4, window_bounds = array<i64: 1, 64>}, {pipeline_mode = #tpu.pipeline_mode<synchronous>, transform_indices = @transform_5, window_bounds = array<i64: 1, 64>}, {pipeline_mode = #tpu.pipeline_mode<synchronous>, transform_indices = @transform_6, window_bounds = array<i64: 1, 128>}, {pipeline_mode = #tpu.pipeline_mode<synchronous>, transform_indices = @transform_7, window_bounds = array<i64: 1, 128>}, {pipeline_mode = #tpu.pipeline_mode<synchronous>, transform_indices = @transform_8, window_bounds = array<i64: 3, 64, 128>}, {pipeline_mode = #tpu.pipeline_mode<synchronous>, transform_indices = @transform_9, window_bounds = array<i64: 3, 128, 128>}, {pipeline_mode = #tpu.pipeline_mode<synchronous>, transform_indices = @transform_10, window_bounds = array<i64: 64, 128>}, {pipeline_mode = #tpu.pipeline_mode<synchronous>, transform_indices = @transform_11, window_bounds = array<i64: 96, 128>}, {pipeline_mode = #tpu.pipeline_mode<synchronous>, transform_indices = @transform_12, window_bounds = array<i64: 96, 128>}, {transform_indices = @transform_13, window_bounds = array<i64: 1, 16, 128>}, {transform_indices = @transform_14, window_bounds = array<i64: 1, 16, 128>}, {transform_indices = @transform_15, window_bounds = array<i64: 1, 16, 128>}]} {
    %c0 = arith.constant 0 : index
    %c0_0 = arith.constant 0 : index
    %c0_1 = arith.constant 0 : index
    %0 = vector.load %arg2[%c0, %c0_0, %c0_1] : memref<1x16x64xf32, #tpu.memory_space<vmem>>, vector<1x16x64xf32>
    %1 = vector.shape_cast %0 : vector<1x16x64xf32> to vector<16x64xf32>
    %c0_2 = arith.constant 0 : index
    %c0_3 = arith.constant 0 : index
    %2 = vector.load %arg5[%c0_2, %c0_3] : memref<1x64xf32, #tpu.memory_space<vmem>>, vector<1x64xf32>
    %3 = vector.broadcast %2 : vector<1x64xf32> to vector<16x64xf32>
    %4 = arith.mulf %1, %3 : vector<16x64xf32>
    %c0_4 = arith.constant 0 : index
    %c0_5 = arith.constant 0 : index
    %5 = vector.load %arg6[%c0_4, %c0_5] : memref<1x64xf32, #tpu.memory_space<vmem>>, vector<1x64xf32>
    %6 = vector.broadcast %5 : vector<1x64xf32> to vector<16x64xf32>
    %7 = arith.addf %4, %6 : vector<16x64xf32>
    %cst = arith.constant 0.000000e+00 : f32
    %8 = vector.broadcast %cst : f32 to vector<16x64xf32>
    %9 = arith.maximumf %7, %8 : vector<16x64xf32>
    %c0_6 = arith.constant 0 : index
    %c0_7 = arith.constant 0 : index
    %10 = vector.load %arg11[%c0_6, %c0_7] : memref<64x128xf32, #tpu.memory_space<vmem>>, vector<64x128xf32>
    %cst_8 = arith.constant dense<0.000000e+00> : vector<16x128xf32>
    %11 = tpu.matmul %9, %10, %cst_8 {dimension_numbers = #tpu.dot_dimension_numbers<[1], [0], [0], [1], [0, 0, 1, 1], [], []>} : vector<16x64xf32>, vector<64x128xf32>, vector<16x128xf32> -> vector<16x128xf32>
    %cst_9 = arith.constant 0.000000e+00 : f32
    %12 = vector.broadcast %cst_9 : f32 to vector<18x64xf32>
    %c0_10 = arith.constant 0 : index
    %c0_11 = arith.constant 0 : index
    %13 = vector.load %arg17[%c0_10, %c0_11] : memref<18x64xf32, #tpu.memory_space<vmem>>, vector<18x64xf32>
    tpu.vector_store %arg17[%c0_10, %c0_11], %12 {strides = array<i32>} : memref<18x64xf32, #tpu.memory_space<vmem>>, vector<18x64xf32>,
    %c1 = arith.constant 1 : index
    %c0_12 = arith.constant 0 : index
    %14 = vector.load %arg17[%c1, %c0_12] : memref<18x64xf32, #tpu.memory_space<vmem>>, vector<16x64xf32>
    tpu.vector_store %arg17[%c1, %c0_12], %9 {strides = array<i32>} : memref<18x64xf32, #tpu.memory_space<vmem>>, vector<16x64xf32>,
    %c0_13 = arith.constant 0 : index
    %c0_14 = arith.constant 0 : index
    %15 = vector.load %arg17[%c0_13, %c0_14] : memref<18x64xf32, #tpu.memory_space<vmem>>, vector<16x64xf32>
    %c0_15 = arith.constant 0 : index
    %c0_16 = arith.constant 0 : index
    %c0_17 = arith.constant 0 : index
    %16 = vector.load %arg9[%c0_15, %c0_16, %c0_17] : memref<3x64x128xf32, #tpu.memory_space<vmem>>, vector<1x64x128xf32>
    %17 = vector.shape_cast %16 : vector<1x64x128xf32> to vector<64x128xf32>
    %cst_18 = arith.constant dense<0.000000e+00> : vector<16x128xf32>
    %18 = tpu.matmul %15, %17, %cst_18 {dimension_numbers = #tpu.dot_dimension_numbers<[1], [0], [0], [1], [0, 0, 1, 1], [], []>} : vector<16x64xf32>, vector<64x128xf32>, vector<16x128xf32> -> vector<16x128xf32>
    %c1_19 = arith.constant 1 : index
    %c0_20 = arith.constant 0 : index
    %19 = vector.load %arg17[%c1_19, %c0_20] : memref<18x64xf32, #tpu.memory_space<vmem>>, vector<16x64xf32>
    %c1_21 = arith.constant 1 : index
    %c0_22 = arith.constant 0 : index
    %c0_23 = arith.constant 0 : index
    %20 = vector.load %arg9[%c1_21, %c0_22, %c0_23] : memref<3x64x128xf32, #tpu.memory_space<vmem>>, vector<1x64x128xf32>
    %21 = vector.shape_cast %20 : vector<1x64x128xf32> to vector<64x128xf32>
    %cst_24 = arith.constant dense<0.000000e+00> : vector<16x128xf32>
    %22 = tpu.matmul %19, %21, %cst_24 {dimension_numbers = #tpu.dot_dimension_numbers<[1], [0], [0], [1], [0, 0, 1, 1], [], []>} : vector<16x64xf32>, vector<64x128xf32>, vector<16x128xf32> -> vector<16x128xf32>
    %23 = arith.addf %18, %22 : vector<16x128xf32>
    %c2 = arith.constant 2 : index
    %c0_25 = arith.constant 0 : index
    %24 = vector.load %arg17[%c2, %c0_25] : memref<18x64xf32, #tpu.memory_space<vmem>>, vector<16x64xf32>
    %c2_26 = arith.constant 2 : index
    %c0_27 = arith.constant 0 : index
    %c0_28 = arith.constant 0 : index
    %25 = vector.load %arg9[%c2_26, %c0_27, %c0_28] : memref<3x64x128xf32, #tpu.memory_space<vmem>>, vector<1x64x128xf32>
    %26 = vector.shape_cast %25 : vector<1x64x128xf32> to vector<64x128xf32>
    %cst_29 = arith.constant dense<0.000000e+00> : vector<16x128xf32>
    %27 = tpu.matmul %24, %26, %cst_29 {dimension_numbers = #tpu.dot_dimension_numbers<[1], [0], [0], [1], [0, 0, 1, 1], [], []>} : vector<16x64xf32>, vector<64x128xf32>, vector<16x128xf32> -> vector<16x128xf32>
    %28 = arith.addf %23, %27 : vector<16x128xf32>
    %c0_30 = arith.constant 0 : index
    %c0_31 = arith.constant 0 : index
    %29 = vector.load %arg7[%c0_30, %c0_31] : memref<1x128xf32, #tpu.memory_space<vmem>>, vector<1x128xf32>
    %30 = vector.broadcast %29 : vector<1x128xf32> to vector<16x128xf32>
    %31 = arith.mulf %28, %30 : vector<16x128xf32>
    %c0_32 = arith.constant 0 : index
    %c0_33 = arith.constant 0 : index
    %32 = vector.load %arg8[%c0_32, %c0_33] : memref<1x128xf32, #tpu.memory_space<vmem>>, vector<1x128xf32>
    %33 = vector.broadcast %32 : vector<1x128xf32> to vector<16x128xf32>
    %34 = arith.addf %31, %33 : vector<16x128xf32>
    %cst_34 = arith.constant 0.000000e+00 : f32
    %35 = vector.broadcast %cst_34 : f32 to vector<16x128xf32>
    %36 = arith.maximumf %34, %35 : vector<16x128xf32>
    %cst_35 = arith.constant 0.000000e+00 : f32
    %37 = vector.broadcast %cst_35 : f32 to vector<18x128xf32>
    %c0_36 = arith.constant 0 : index
    %c0_37 = arith.constant 0 : index
    %38 = vector.load %arg18[%c0_36, %c0_37] : memref<18x128xf32, #tpu.memory_space<vmem>>, vector<18x128xf32>
    tpu.vector_store %arg18[%c0_36, %c0_37], %37 {strides = array<i32>} : memref<18x128xf32, #tpu.memory_space<vmem>>, vector<18x128xf32>,
    %c1_38 = arith.constant 1 : index
    %c0_39 = arith.constant 0 : index
    %39 = vector.load %arg18[%c1_38, %c0_39] : memref<18x128xf32, #tpu.memory_space<vmem>>, vector<16x128xf32>
    tpu.vector_store %arg18[%c1_38, %c0_39], %36 {strides = array<i32>} : memref<18x128xf32, #tpu.memory_space<vmem>>, vector<16x128xf32>,
    %c0_40 = arith.constant 0 : index
    %c0_41 = arith.constant 0 : index
    %40 = vector.load %arg18[%c0_40, %c0_41] : memref<18x128xf32, #tpu.memory_space<vmem>>, vector<16x128xf32>
    %c0_42 = arith.constant 0 : index
    %c0_43 = arith.constant 0 : index
    %c0_44 = arith.constant 0 : index
    %41 = vector.load %arg10[%c0_42, %c0_43, %c0_44] : memref<3x128x128xf32, #tpu.memory_space<vmem>>, vector<1x128x128xf32>
    %42 = vector.shape_cast %41 : vector<1x128x128xf32> to vector<128x128xf32>
    %cst_45 = arith.constant dense<0.000000e+00> : vector<16x128xf32>
    %43 = tpu.matmul %40, %42, %cst_45 {dimension_numbers = #tpu.dot_dimension_numbers<[1], [0], [0], [1], [0, 0, 1, 1], [], []>} : vector<16x128xf32>, vector<128x128xf32>, vector<16x128xf32> -> vector<16x128xf32>
    %c1_46 = arith.constant 1 : index
    %c0_47 = arith.constant 0 : index
    %44 = vector.load %arg18[%c1_46, %c0_47] : memref<18x128xf32, #tpu.memory_space<vmem>>, vector<16x128xf32>
    %c1_48 = arith.constant 1 : index
    %c0_49 = arith.constant 0 : index
    %c0_50 = arith.constant 0 : index
    %45 = vector.load %arg10[%c1_48, %c0_49, %c0_50] : memref<3x128x128xf32, #tpu.memory_space<vmem>>, vector<1x128x128xf32>
    %46 = vector.shape_cast %45 : vector<1x128x128xf32> to vector<128x128xf32>
    %cst_51 = arith.constant dense<0.000000e+00> : vector<16x128xf32>
    %47 = tpu.matmul %44, %46, %cst_51 {dimension_numbers = #tpu.dot_dimension_numbers<[1], [0], [0], [1], [0, 0, 1, 1], [], []>} : vector<16x128xf32>, vector<128x128xf32>, vector<16x128xf32> -> vector<16x128xf32>
    %48 = arith.addf %43, %47 : vector<16x128xf32>
    %c2_52 = arith.constant 2 : index
    %c0_53 = arith.constant 0 : index
    %49 = vector.load %arg18[%c2_52, %c0_53] : memref<18x128xf32, #tpu.memory_space<vmem>>, vector<16x128xf32>
    %c2_54 = arith.constant 2 : index
    %c0_55 = arith.constant 0 : index
    %c0_56 = arith.constant 0 : index
    %50 = vector.load %arg10[%c2_54, %c0_55, %c0_56] : memref<3x128x128xf32, #tpu.memory_space<vmem>>, vector<1x128x128xf32>
    %51 = vector.shape_cast %50 : vector<1x128x128xf32> to vector<128x128xf32>
    %cst_57 = arith.constant dense<0.000000e+00> : vector<16x128xf32>
    %52 = tpu.matmul %49, %51, %cst_57 {dimension_numbers = #tpu.dot_dimension_numbers<[1], [0], [0], [1], [0, 0, 1, 1], [], []>} : vector<16x128xf32>, vector<128x128xf32>, vector<16x128xf32> -> vector<16x128xf32>
    %53 = arith.addf %48, %52 : vector<16x128xf32>
    %c0_58 = arith.constant 0 : index
    %c0_59 = arith.constant 0 : index
    %c0_60 = arith.constant 0 : index
    %54 = vector.load %arg3[%c0_58, %c0_59, %c0_60] : memref<1x16x96xf32, #tpu.memory_space<vmem>>, vector<1x16x96xf32>
    %55 = vector.shape_cast %54 : vector<1x16x96xf32> to vector<16x96xf32>
    %c0_61 = arith.constant 0 : index
    %c0_62 = arith.constant 0 : index
    %56 = vector.load %arg12[%c0_61, %c0_62] : memref<96x128xf32, #tpu.memory_space<vmem>>, vector<96x128xf32>
    %cst_63 = arith.constant dense<0.000000e+00> : vector<16x128xf32>
    %57 = tpu.matmul %55, %56, %cst_63 {dimension_numbers = #tpu.dot_dimension_numbers<[1], [0], [0], [1], [0, 0, 1, 1], [], []>} : vector<16x96xf32>, vector<96x128xf32>, vector<16x128xf32> -> vector<16x128xf32>
    %c0_64 = arith.constant 0 : index
    %c0_65 = arith.constant 0 : index
    %c0_66 = arith.constant 0 : index
    %58 = vector.load %arg4[%c0_64, %c0_65, %c0_66] : memref<1x16x96xf32, #tpu.memory_space<vmem>>, vector<1x16x96xf32>
    %59 = vector.shape_cast %58 : vector<1x16x96xf32> to vector<16x96xf32>
    %c0_67 = arith.constant 0 : index
    %c0_68 = arith.constant 0 : index
    %60 = vector.load %arg13[%c0_67, %c0_68] : memref<96x128xf32, #tpu.memory_space<vmem>>, vector<96x128xf32>
    %cst_69 = arith.constant dense<0.000000e+00> : vector<16x128xf32>
    %61 = tpu.matmul %59, %60, %cst_69 {dimension_numbers = #tpu.dot_dimension_numbers<[1], [0], [0], [1], [0, 0, 1, 1], [], []>} : vector<16x96xf32>, vector<96x128xf32>, vector<16x128xf32> -> vector<16x128xf32>
    %c0_70 = arith.constant 0 : index
    %c0_71 = arith.constant 0 : index
    %62 = vector.load %arg1[%c0_70, %c0_71] : memref<1x2xf32, #tpu.memory_space<vmem>>, vector<1x1xf32>
    %c0_72 = arith.constant 0 : index
    %c1_73 = arith.constant 1 : index
    %63 = vector.load %arg1[%c0_72, %c1_73] : memref<1x2xf32, #tpu.memory_space<vmem>>, vector<1x1xf32>
    %64 = vector.broadcast %62 : vector<1x1xf32> to vector<16x128xf32>
    %65 = arith.mulf %64, %11 : vector<16x128xf32>
    %66 = arith.addf %53, %65 : vector<16x128xf32>
    %67 = vector.broadcast %63 : vector<1x1xf32> to vector<16x128xf32>
    %68 = arith.mulf %67, %57 : vector<16x128xf32>
    %69 = arith.addf %66, %68 : vector<16x128xf32>
    %70 = arith.addf %69, %61 : vector<16x128xf32>
    %c0_74 = arith.constant 0 : index
    %c0_75 = arith.constant 0 : index
    %c0_76 = arith.constant 0 : index
    %71 = vector.load %arg14[%c0_74, %c0_75, %c0_76] : memref<1x16x128xf32, #tpu.memory_space<vmem>>, vector<1x16x128xf32>
    %72 = vector.shape_cast %71 : vector<1x16x128xf32> to vector<16x128xf32>
    %73 = vector.shape_cast %70 : vector<16x128xf32> to vector<1x16x128xf32>
    tpu.vector_store %arg14[%c0_74, %c0_75, %c0_76], %73 {strides = array<i32>} : memref<1x16x128xf32, #tpu.memory_space<vmem>>, vector<1x16x128xf32>,
    %c0_77 = arith.constant 0 : index
    %c0_78 = arith.constant 0 : index
    %c0_79 = arith.constant 0 : index
    %74 = vector.load %arg15[%c0_77, %c0_78, %c0_79] : memref<1x16x128xf32, #tpu.memory_space<vmem>>, vector<1x16x128xf32>
    %75 = vector.shape_cast %74 : vector<1x16x128xf32> to vector<16x128xf32>
    %76 = vector.shape_cast %11 : vector<16x128xf32> to vector<1x16x128xf32>
    tpu.vector_store %arg15[%c0_77, %c0_78, %c0_79], %76 {strides = array<i32>} : memref<1x16x128xf32, #tpu.memory_space<vmem>>, vector<1x16x128xf32>,
    %c0_80 = arith.constant 0 : index
    %c0_81 = arith.constant 0 : index
    %c0_82 = arith.constant 0 : index
    %77 = vector.load %arg16[%c0_80, %c0_81, %c0_82] : memref<1x16x128xf32, #tpu.memory_space<vmem>>, vector<1x16x128xf32>
    %78 = vector.shape_cast %77 : vector<1x16x128xf32> to vector<16x128xf32>
    %79 = vector.shape_cast %57 : vector<16x128xf32> to vector<1x16x128xf32>
    tpu.vector_store %arg16[%c0_80, %c0_81, %c0_82], %79 {strides = array<i32>} : memref<1x16x128xf32, #tpu.memory_space<vmem>>, vector<1x16x128xf32>,
    return
  }
  func.func @transform_0(%arg0: i32) -> (i32, i32) {
    %c0_i32 = arith.constant 0 : i32
    %c0_i32_0 = arith.constant 0 : i32
    %c0_i32_1 = arith.constant 0 : i32
    return %c0_i32, %c0_i32_0 : i32, i32
  }
  func.func @transform_1(%arg0: i32) -> (i32, i32, i32) {
    %c0_i32 = arith.constant 0 : i32
    %c0_i32_0 = arith.constant 0 : i32
    %c0_i32_1 = arith.constant 0 : i32
    return %arg0, %c0_i32, %c0_i32_0 : i32, i32, i32
  }
  func.func @transform_2(%arg0: i32) -> (i32, i32, i32) {
    %c0_i32 = arith.constant 0 : i32
    %c0_i32_0 = arith.constant 0 : i32
    %c0_i32_1 = arith.constant 0 : i32
    return %arg0, %c0_i32, %c0_i32_0 : i32, i32, i32
  }
  func.func @transform_3(%arg0: i32) -> (i32, i32, i32) {
    %c0_i32 = arith.constant 0 : i32
    %c0_i32_0 = arith.constant 0 : i32
    %c0_i32_1 = arith.constant 0 : i32
    return %arg0, %c0_i32, %c0_i32_0 : i32, i32, i32
  }
  func.func @transform_4(%arg0: i32) -> (i32, i32) {
    %c0_i32 = arith.constant 0 : i32
    %c0_i32_0 = arith.constant 0 : i32
    %c0_i32_1 = arith.constant 0 : i32
    return %c0_i32, %c0_i32_0 : i32, i32
  }
  func.func @transform_5(%arg0: i32) -> (i32, i32) {
    %c0_i32 = arith.constant 0 : i32
    %c0_i32_0 = arith.constant 0 : i32
    %c0_i32_1 = arith.constant 0 : i32
    return %c0_i32, %c0_i32_0 : i32, i32
  }
  func.func @transform_6(%arg0: i32) -> (i32, i32) {
    %c0_i32 = arith.constant 0 : i32
    %c0_i32_0 = arith.constant 0 : i32
    %c0_i32_1 = arith.constant 0 : i32
    return %c0_i32, %c0_i32_0 : i32, i32
  }
  func.func @transform_7(%arg0: i32) -> (i32, i32) {
    %c0_i32 = arith.constant 0 : i32
    %c0_i32_0 = arith.constant 0 : i32
    %c0_i32_1 = arith.constant 0 : i32
    return %c0_i32, %c0_i32_0 : i32, i32
  }
  func.func @transform_8(%arg0: i32) -> (i32, i32, i32) {
    %c0_i32 = arith.constant 0 : i32
    %c0_i32_0 = arith.constant 0 : i32
    %c0_i32_1 = arith.constant 0 : i32
    %c0_i32_2 = arith.constant 0 : i32
    return %c0_i32, %c0_i32_0, %c0_i32_1 : i32, i32, i32
  }
  func.func @transform_9(%arg0: i32) -> (i32, i32, i32) {
    %c0_i32 = arith.constant 0 : i32
    %c0_i32_0 = arith.constant 0 : i32
    %c0_i32_1 = arith.constant 0 : i32
    %c0_i32_2 = arith.constant 0 : i32
    return %c0_i32, %c0_i32_0, %c0_i32_1 : i32, i32, i32
  }
  func.func @transform_10(%arg0: i32) -> (i32, i32) {
    %c0_i32 = arith.constant 0 : i32
    %c0_i32_0 = arith.constant 0 : i32
    %c0_i32_1 = arith.constant 0 : i32
    return %c0_i32, %c0_i32_0 : i32, i32
  }
  func.func @transform_11(%arg0: i32) -> (i32, i32) {
    %c0_i32 = arith.constant 0 : i32
    %c0_i32_0 = arith.constant 0 : i32
    %c0_i32_1 = arith.constant 0 : i32
    return %c0_i32, %c0_i32_0 : i32, i32
  }
  func.func @transform_12(%arg0: i32) -> (i32, i32) {
    %c0_i32 = arith.constant 0 : i32
    %c0_i32_0 = arith.constant 0 : i32
    %c0_i32_1 = arith.constant 0 : i32
    return %c0_i32, %c0_i32_0 : i32, i32
  }
  func.func @transform_13(%arg0: i32) -> (i32, i32, i32) {
    %c0_i32 = arith.constant 0 : i32
    %c0_i32_0 = arith.constant 0 : i32
    %c0_i32_1 = arith.constant 0 : i32
    return %arg0, %c0_i32, %c0_i32_0 : i32, i32, i32
  }
  func.func @transform_14(%arg0: i32) -> (i32, i32, i32) {
    %c0_i32 = arith.constant 0 : i32
    %c0_i32_0 = arith.constant 0 : i32
    %c0_i32_1 = arith.constant 0 : i32
    return %arg0, %c0_i32, %c0_i32_0 : i32, i32, i32
  }
  func.func @transform_15(%arg0: i32) -> (i32, i32, i32) {
    %c0_i32 = arith.constant 0 : i32
    %c0_i32_0 = arith.constant 0 : i32
    %c0_i32_1 = arith.constant 0 : i32
    return %arg0, %c0_i32, %c0_i32_0 : i32, i32, i32
  }
}

</mosaic_0001>

<bundles_post_ra>
// kernel: tpu_custom_call.1
= control target key start
LH: loop header
LB: loop body
LE: loop exit
PB: predicated region body
PF: predicated region fallthrough
CT: control target
= control target key end

     0   :  { %s3781_s0 = inlined_call_operand.hbm [shape: f32[1,2], index: 0, kind: input, shape index: {}]   ;;  %s3782_s1 = inlined_call_operand.hbm [shape: f32[2,16,64], index: 1, kind: input, shape index: {}]   ;;  %s3783_s2 = inlined_call_operand.hbm [shape: f32[2,16,96], index: 2, kind: input, shape index: {}]   ;;  %s3784_s3 = inlined_call_operand.hbm [shape: f32[2,16,96], index: 3, kind: input, shape index: {}]   ;;  %s3785_s4 = inlined_call_operand.vmem [shape: f32[1,64], index: 4, kind: input, shape index: {}]   ;;  %s3786_s5 = inlined_call_operand.vmem [shape: f32[1,64], index: 5, kind: input, shape index: {}]   ;;  %s3787_s6 = inlined_call_operand.vmem [shape: f32[1,128], index: 6, kind: input, shape index: {}]   ;;  %s3788_s7 = inlined_call_operand.vmem [shape: f32[1,128], index: 7, kind: input, shape index: {}]   ;;  %s3789_s8 = inlined_call_operand.hbm [shape: f32[3,64,128], index: 8, kind: input, shape index: {}]   ;;  %s3790_s9 = inlined_call_operand.hbm [shape: f32[3,128,128], index: 9, kind: input, shape index: {}]   ;;  %s3791_s10 = inlined_call_operand.hbm [shape: f32[64,128], index: 10, kind: input, shape index: {}]   ;;  %s3792_s11 = inlined_call_operand.hbm [shape: f32[96,128], index: 11, kind: input, shape index: {}]   ;;  %s3793_s12 = inlined_call_operand.hbm [shape: f32[96,128], index: 12, kind: input, shape index: {}]   ;;  %s3794_s13 = inlined_call_operand.hbm [shape: f32[2,16,128], index: 13, kind: output, shape index: {0}]   ;;  %s3795_s14 = inlined_call_operand.hbm [shape: f32[2,16,128], index: 14, kind: output, shape index: {1}]   ;;  %s3796_s15 = inlined_call_operand.hbm [shape: f32[2,16,128], index: 15, kind: output, shape index: {2}]  }
   0x1   :  { %3826 = sst [smem:[#allocation38_spill]] %s3781_s0 }
   0x2   :  { %3827 = sst [smem:[#allocation39_spill]] %s3782_s1 }
   0x3   :  { %3828 = sst [smem:[#allocation40_spill]] %s3785_s4 }
   0x4   :  { %3829 = sst [smem:[#allocation41_spill]] %s3786_s5 }
   0x5   :  { %3830 = sst [smem:[#allocation42_spill]] %s3787_s6 }
   0x6   :  { %3831 = sst [smem:[#allocation43_spill]] %s3788_s7 }
   0x7   :  { %3832 = sst [smem:[#allocation44_spill]] %s3789_s8 }
   0x8   :  { %3833 = sst [smem:[#allocation45_spill]] %s3790_s9 }
   0x9   :  { %3834 = sst [smem:[#allocation46_spill]] %s3792_s11 }
   0xa   :  { %3835 = sst [smem:[#allocation47_spill]] %s3794_s13 }
   0xb   :  { %3836 = sst [smem:[#allocation48_spill]] %s3795_s14 }
   0xc   :  { %3837 = sst [smem:[#allocation49_spill]] %s3796_s15 }
   0xd   :  { %21 = vsyncpa [#allocation5], 0 }
   0xe   :  { %22 = vsyncpa [#allocation8], 0 }
   0xf   :  { %24 = vsyncpa [#allocation8 + $0x1], 0 }
  0x10   :  { %25 = vsyncpa [#allocation11], 0 }
  0x11   :  { %27 = vsyncpa [#allocation11 + $0x1], 0 }
  0x12   :  { %28 = vsyncpa [#allocation14], 0 }
  0x13   :  { %29 = vsyncpa [#allocation17], 0 }
  0x14   :  { %30 = vsyncpa [#allocation6], 0 }
  0x15   :  { %32 = vsyncpa [#allocation6 + $0x1], 0 }
  0x16   :  { %33 = vsyncpa [#allocation21], 0 }
  0x17   :  { %35 = vsyncpa [#allocation21 + $0x1], 0  ;;  %s3194_s18 = smov 0   ;;  %s3196_s19 = smov 0  }
  0x18   :  { %s3198_s20 = smov 0   ;;  %s3200_s21 = smov 0  }
  0x19 LB: > { %3838 = sst [smem:[#allocation31_spill]] %s3081_s18  ;;  %s3095_s22 = smov [#allocation12]   ;;  %s3093_s21 = sphi %s3200_s21, %s3891_s21   ;;  %s3089_s20 = sphi %s3198_s20, %s3893_s20   ;;  %s3085_s19 = sphi %s3196_s19, %s3895_s19   ;;  %s3081_s18 = sphi %s3194_s18, %s3894_s18  }
  0x1a   : > { %3839 = sst [smem:[#allocation32_spill]] %s3089_s20  ;;  %s447_s23 = sshll.u32 %s3095_s22, 4  ;;  %s3220_s23 = int_to_ptr.vmem [resolvable:$true] %s447_s23 }
  0x1b   : > { %s3215_s24 = sadd.s32 4294967295, %s3093_s21   ;;  %p1910_p0 = scmp.ge.s32.totalorder %s3093_s21, 1 }
  0x1c   : > { %p3807_p1 = scmp.eq.s32.totalorder %s3215_s24, 0  ;;  %p412_p2 = scmp.lt.s32.totalorder %s3093_s21, 3 }
  0x1d   : > { %s3096_s26 = smov [#allocation13]   ;;  %s3097_s29 = smov [#allocation16]  }
  0x1e   : > { %p3222_p3 = pnand %p1910_p0, %p412_p2  ;;  %s460_s27 = sshll.u32 %s3096_s26, 4  ;;  %s3235_s27 = int_to_ptr.vmem [resolvable:$true] %s460_s27 }
  0x1f   : > { %s486_s30 = sshll.u32 %s3097_s29, 4  ;;  %s3842_s8 = sld [smem:[#allocation44_spill]]  ;;  %s3237_s30 = int_to_ptr.vmem [resolvable:$true] %s486_s30 }
  0x20   : > { %s3840_s25 = scalar_select %p3222_p3, 1, 0 }
  0x21   : > { %p2589_p5 = pneg %p3222_p3 }
  0x23   : > { %p3231_p6 = pnand %p2589_p5, %p3807_p1 }
  0x25   : > { %s3841_s28 = scalar_select %p3231_p6, 1, 0 }
  0x26   : > { %s2689_s22 = scalar_lea.hbm %s3842_s8, 3072  ;;  %p3247_p8 = pneg %p3231_p6 }
  0x27   : > { %p2690_p7 = scmp.ne.s32.totalorder %s3842_s8, %s2689_s22  ;;  %p2696_p11 = scmp.lt.u32.totalorder %s2689_s22, %s3842_s8 }
  0x28   : > { %s3843_s26 = scalar_select %p3247_p8, 1, 0 }
  0x29   : > { %p2692_p9 = pnand %p3247_p8, %p2690_p7 }
  0x2b   : > { %p2693_p10 = pneg %p2692_p9 }
  0x2d   : > { %p2698_p12 = pnand %p2696_p11, %p2693_p10 }
  0x2f   : > { %2701 = shalt.err (!%p2698_p12)
}
  0x30   : > { %s2702_s13 = scalar_lea.vmem %s3220_s23, 3072  ;;  %p2710_p5 = scmp.lt.s32.totalorder %s3220_s23, %s3220_s23 }
  0x31   : > { %p2703_p13 = scmp.ne.s32.totalorder %s3220_s23, %s2702_s13  ;;  %p2711_p4 = scmp.lt.s32.totalorder %s2702_s13, %s2702_s13 }
  0x33   : > { %p2705_p0 = pnand %p2703_p13, %p3247_p8  ;;  %p2712_p7 = por %p2711_p4, %p2710_p5 }
  0x35   : > { %p2706_p2 = pneg %p2705_p0 }
  0x37   : > { %p2713_p9 = pnand %p2712_p7, %p2706_p2 }
  0x39   : > { %2716 = shalt.err (!%p2713_p9)
}
  0x3a   : > { %s3801_s15 = smov 128   ;;  %s3804_s14 = smov 8  }
  0x3b   : > { %2595 = dma.hbm_to_vmem [thread:$0]  (!%p3231_p6), %s3842_s8, 3072, %s3220_s23, [#allocation11], %s3801_s15, %s3801_s15, %s3804_s14  }
  0x3c   : > { %s3844_s9 = sld [smem:[#allocation45_spill]] }
  0x42   : > { %s2717_s13 = scalar_lea.hbm %s3844_s9, 6144 }
  0x43   : > { %p2718_p4 = scmp.ne.s32.totalorder %s3844_s9, %s2717_s13  ;;  %p2724_p12 = scmp.lt.u32.totalorder %s2717_s13, %s3844_s9 }
  0x45   : > { %p2720_p10 = pnand %p2718_p4, %p3247_p8 }
  0x47   : > { %p2721_p11 = pneg %p2720_p10 }
  0x49   : > { %p2726_p13 = pnand %p2724_p12, %p2721_p11 }
  0x4b   : > { %2729 = shalt.err (!%p2726_p13)
}
  0x4c   : > { %s2730_s23 = scalar_lea.vmem %s3235_s27, 6144  ;;  %p2738_p7 = scmp.lt.s32.totalorder %s3235_s27, %s3235_s27 }
  0x4d   : > { %p2731_p0 = scmp.ne.s32.totalorder %s3235_s27, %s2730_s23  ;;  %p2739_p9 = scmp.lt.s32.totalorder %s2730_s23, %s2730_s23 }
  0x4f   : > { %p2733_p2 = pnand %p2731_p0, %p3247_p8  ;;  %p2740_p4 = por %p2739_p9, %p2738_p7 }
  0x51   : > { %p2734_p5 = pneg %p2733_p2 }
  0x53   : > { %p2741_p10 = pnand %p2740_p4, %p2734_p5 }
  0x55   : > { %2744 = shalt.err (!%p2741_p10)
}
  0x56   : > { %2598 = dma.hbm_to_vmem [thread:$0]  (!%p3231_p6), %s3844_s9, 6144, %s3235_s27, [#allocation14], %s3801_s15, %s3801_s15, %s3804_s14  }
  0x57   : > { %s3845_s11 = sld [smem:[#allocation46_spill]] }
  0x5d   : > { %s2745_s16 = scalar_lea.hbm %s3845_s11, 1536 }
  0x5e   : > { %p2746_p11 = scmp.ne.s32.totalorder %s3845_s11, %s2745_s16  ;;  %p2752_p0 = scmp.lt.u32.totalorder %s2745_s16, %s3845_s11 }
  0x60   : > { %p2748_p12 = pnand %p2746_p11, %p3247_p8 }
  0x62   : > { %p2749_p13 = pneg %p2748_p12 }
  0x64   : > { %p2754_p2 = pnand %p2752_p0, %p2749_p13 }
  0x66   : > { %2757 = shalt.err (!%p2754_p2)
}
  0x67   : > { %s2758_s27 = scalar_lea.vmem %s3237_s30, 1536  ;;  %p2766_p4 = scmp.lt.s32.totalorder %s3237_s30, %s3237_s30 }
  0x68   : > { %p2759_p5 = scmp.ne.s32.totalorder %s3237_s30, %s2758_s27  ;;  %p2767_p10 = scmp.lt.s32.totalorder %s2758_s27, %s2758_s27 }
  0x6a   : > { %p2761_p7 = pnand %p2759_p5, %p3247_p8  ;;  %p2768_p11 = por %p2767_p10, %p2766_p4 }
  0x6c   : > { %p2762_p9 = pneg %p2761_p7 }
  0x6e   : > { %p2769_p12 = pnand %p2768_p11, %p2762_p9 }
  0x70   : > { %2772 = shalt.err (!%p2769_p12)
}
  0x71   : > { %2604 = dma.hbm_to_vmem [thread:$0]  (!%p3231_p6), %s3845_s11, 1536, %s3237_s30, [#allocation17], %s3801_s15, %s3801_s15, %s3804_s14  }
  0x72   : > { %s3803_s5 = sadd.s32 4294967294, %s3093_s21   ;;  %s3325_s6 = sadd.s32 1, %s3093_s21  }
  0x73   : > { %3846 = sst [smem:[#allocation33_spill]] %s3325_s6  ;;  %s69_s7 = sadd.s32 1, %s3089_s20 }
  0x74   : > { %s66_s16 = ssub.s32 %s3093_s21, %s3325_s6  ;;  %p76_p13 = scmp.ne.s32.totalorder %s3089_s20, %s3085_s19 }
  0x75   : > { %p67_p0 = scmp.eq.s32.totalorder %s66_s16, 0  ;;  %p77_p2 = scmp.eq.s32.totalorder %s3093_s21, 0 }
  0x76   : > { %p82_p5 = scmp.ne.s32.totalorder %s3085_s19, %s3081_s18  ;;  %p347_p7 = scmp.eq.s32.totalorder %s3215_s24, 1 }
  0x77   : > { %s3337_s17 = scalar_select %p67_p0, %s3089_s20, %s69_s7  }
  0x78   : > { %p78_p9 = por %p77_p2, %p76_p13  ;;  %p3341_p4 = por %p3807_p1, %p82_p5 }
  0x79   : > { %3847 = sst [smem:[#allocation34_spill]] %s3337_s17  ;;  %p3345_p10 = por %p347_p7, %p76_p13 }
  0x7a   : > { %s3848_s30 = scalar_select %p3341_p4, 1, 0 }
  0x7b   : > { %s3850_s22 = scalar_select %p3345_p10, 1, 0 }
  0x7c   : > { %3849 = sst [smem:[#allocation35_spill]] %s3848_s30  ;;  %p353_p11 = scmp.eq.s32.totalorder %s3803_s5, 1 }
  0x7d   : > { %3851 = sst [smem:[#allocation36_spill]] %s3850_s22  ;;  %p2634_p12 = scmp.lt.s32.totalorder %s3093_s21, 2 }
  0x7e   : > { %p3353_p3 = por %p353_p11, %p82_p5  ;;  %s515_s27 = sand.u32 1, %s3089_s20  }
  0x7f   : > { %s3359_s23 = sshll.u32 %s3093_s21, 8  ;;  %s3361_s4 = sshll.u32 %s515_s27, 4 }
  0x80   : > { %s3852_s13 = scalar_select %p3353_p3, 1, 0 }
  0x81   : > { %s3854_s1 = sld [smem:[#allocation39_spill]]  ;;  %p3369_p13 = pnand %p2634_p12, %p78_p9 }
  0x82   : > { %3853 = sst [smem:[#allocation37_spill]] %s3852_s13  ;;  %s517_s14 = scalar_lea.vmem [#allocation7], %s3361_s4 }
  0x83   : > { %s3855_s5 = scalar_select %p3369_p13, 1, 0 }
  0x84   : > { %s524_s29 = sshll.u32 %s517_s14, 4  ;;  %s3856_s27 = sand.u32 1, %s3093_s21   ;;  %s3374_s29 = int_to_ptr.vmem [resolvable:$true] %s524_s29 }
  0x85   : > { %s3378_s8 = scalar_lea.sflag [#allocation8], %s3856_s27  ;;  %p3384_p2 = pneg %p3369_p13 }
  0x87   : > { %s3367_s15 = scalar_lea.hbm %s3854_s1, %s3359_s23  ;;  %s2778_s14 = scalar_lea.hbm %s3854_s1, 512 }
  0x88   : > { %s2773_s7 = scalar_lea.hbm %s3367_s15, 256  ;;  %p2779_p9 = scmp.lt.u32.totalorder %s3367_s15, %s3854_s1 }
  0x89   : > { %p2774_p0 = scmp.ne.s32.totalorder %s3367_s15, %s2773_s7  ;;  %p2780_p11 = scmp.lt.u32.totalorder %s2778_s14, %s2773_s7 }
  0x8a   : > { %s3857_s16 = scalar_select %p3384_p2, 1, 0 }
  0x8b   : > { %p2776_p5 = pnand %p3384_p2, %p2774_p0  ;;  %p2781_p12 = por %p2780_p11, %p2779_p9 }
  0x8c   : > { %p2782_p1 = scmp.lt.u32.totalorder %s2773_s7, %s3367_s15 }
  0x8d   : > { %p2777_p7 = pneg %p2776_p5 }
  0x8e   : > { %p2783_p3 = por %p2782_p1, %p2781_p12 }
  0x90   : > { %p2784_p10 = pnand %p2783_p3, %p2777_p7 }
  0x92   : > { %2787 = shalt.err (!%p2784_p10)
}
  0x93   : > { %s2788_s27 = scalar_lea.vmem %s3374_s29, 256  ;;  %s3100_s9 = smov [#allocation7]  }
  0x94   : > { %p2789_p0 = scmp.ne.s32.totalorder %s3374_s29, %s2788_s27  ;;  %s2793_s11 = sshll.u32 %s3100_s9, 4  ;;  %s2794_s11 = int_to_ptr.vmem [resolvable:$false] %s2793_s11 }
  0x95   : > { %s2795_s20 = scalar_lea.vmem %s2794_s11, 512  ;;  %p2796_p6 = scmp.lt.s32.totalorder %s3374_s29, %s2794_s11 }
  0x96   : > { %p2791_p5 = pnand %p2789_p0, %p3384_p2  ;;  %p2797_p8 = scmp.lt.s32.totalorder %s2795_s20, %s2788_s27 }
  0x98   : > { %p2792_p4 = pneg %p2791_p5  ;;  %p2798_p9 = por %p2797_p8, %p2796_p6 }
  0x9a   : > { %p2799_p11 = pnand %p2798_p9, %p2792_p4 }
  0x9c   : > { %2802 = shalt.err (!%p2799_p11)
}
  0x9d   : > { %s3858_s17 = smov 8   ;;  %s3859_s7 = smov 128  }
  0x9e   : > { %2611 = dma.hbm_to_vmem [thread:$0]  (!%p3369_p13), %s3367_s15, 256, %s3374_s29, %s3378_s8, %s3859_s7, %s3859_s7, %s3858_s17  }
  0x9f   : > { %s3101_s14 = smov [#allocation4]   ;;  %s3102_s9 = smov [#allocation15]  }
  0xa0   : > { %s425_s1 = sshll.u32 %s3101_s14, 4  ;;  %s473_s6 = sshll.u32 %s3102_s9, 4  ;;  %s426_s1 = int_to_ptr.vmem [resolvable:$true] %s425_s1  ;;  %s3411_s6 = int_to_ptr.vmem [resolvable:$true] %s473_s6 }
  0xa1   : > { %s3860_s0 = sld [smem:[#allocation38_spill]]  ;;  %p3861_p3 = scmp.ne.s32.totalorder %s3843_s26, 0 }
  0xa7   : > { %s2803_s20 = scalar_lea.hbm %s3860_s0, 16 }
  0xa8   : > { %p2804_p1 = scmp.ne.s32.totalorder %s3860_s0, %s2803_s20  ;;  %p2810_p4 = scmp.lt.u32.totalorder %s2803_s20, %s3860_s0 }
  0xaa   : > { %p2806_p6 = pnand %p2804_p1, %p3861_p3 }
  0xac   : > { %p2807_p8 = pneg %p2806_p6 }
  0xae   : > { %p2812_p10 = pnand %p2810_p4, %p2807_p8 }
  0xb0   : > { %2815 = shalt.err (!%p2812_p10)
}
  0xb1   : > { %s2816_s29 = scalar_lea.vmem %s426_s1, 16  ;;  %s2823_s14 = scalar_lea.vmem %s426_s1, 32 }
  0xb2   : > { %p2817_p7 = scmp.ne.s32.totalorder %s426_s1, %s2816_s29  ;;  %p2824_p5 = scmp.lt.s32.totalorder %s426_s1, %s426_s1 }
  0xb3   : > { %p2825_p9 = scmp.lt.s32.totalorder %s2823_s14, %s2816_s29 }
  0xb4   : > { %p2819_p12 = pnand %p2817_p7, %p3861_p3 }
  0xb5   : > { %p2826_p11 = por %p2825_p9, %p2824_p5 }
  0xb6   : > { %p2820_p0 = pneg %p2819_p12 }
  0xb8   : > { %p2827_p13 = pnand %p2826_p11, %p2820_p0 }
  0xba   : > { %2830 = shalt.err (!%p2827_p13)
}
  0xbb   : > { %p3862_p1 = scmp.ne.s32.totalorder %s3841_s28, 0  ;;  %s2831_s27 = scalar_lea.hbm %s3791_s10, 1024 }
  0xbc   : > { %p2832_p6 = scmp.ne.s32.totalorder %s3791_s10, %s2831_s27  ;;  %p2838_p13 = scmp.lt.u32.totalorder %s2831_s27, %s3791_s10 }
  0xbd   : > { %2592 = dma.hbm_to_vmem [thread:$0]  (!%p3862_p1), %s3860_s0, 16, %s426_s1, [#allocation5]  }
  0xbe   : > { %p2834_p8 = pnand %p2832_p6, %p3861_p3 }
  0xc0   : > { %p2835_p4 = pneg %p2834_p8 }
  0xc2   : > { %p2840_p10 = pnand %p2838_p13, %p2835_p4 }
  0xc4   : > { %2843 = shalt.err (!%p2840_p10)
}
  0xc5   : > { %s2844_s1 = scalar_lea.vmem %s3411_s6, 1024  ;;  %p2852_p5 = scmp.lt.s32.totalorder %s3411_s6, %s3411_s6 }
  0xc6   : > { %p2845_p7 = scmp.ne.s32.totalorder %s3411_s6, %s2844_s1  ;;  %p2853_p9 = scmp.lt.s32.totalorder %s2844_s1, %s2844_s1 }
  0xc8   : > { %p2847_p12 = pnand %p2845_p7, %p3861_p3  ;;  %p2854_p11 = por %p2853_p9, %p2852_p5 }
  0xca   : > { %p2848_p0 = pneg %p2847_p12 }
  0xcc   : > { %p2855_p6 = pnand %p2854_p11, %p2848_p0 }
  0xce   : > { %2858 = shalt.err (!%p2855_p6)
}
  0xcf   : > { %2601 = dma.hbm_to_vmem [thread:$0]  (!%p3862_p1), %s3791_s10, 1024, %s3411_s6, [#allocation14], %s3859_s7, %s3859_s7, %s3858_s17  }
  0xd0   : > { %s3103_s13 = smov [#allocation18]   ;;  %s3461_s11 = scalar_lea.hbm %s3783_s2, %s3359_s23 }
  0xd1   : > { %s499_s22 = sshll.u32 %s3103_s13, 4  ;;  %s538_s20 = scalar_lea.vmem [#allocation9], %s3361_s4  ;;  %s500_s22 = int_to_ptr.vmem [resolvable:$true] %s499_s22 }
  0xd2   : > { %s545_s15 = sshll.u32 %s538_s20, 4  ;;  %s2859_s0 = scalar_lea.hbm %s3793_s12, 1536  ;;  %s3485_s15 = int_to_ptr.vmem [resolvable:$true] %s545_s15 }
  0xd3   : > { %p2860_p8 = scmp.ne.s32.totalorder %s3793_s12, %s2859_s0  ;;  %p2866_p10 = scmp.lt.u32.totalorder %s2859_s0, %s3793_s12 }
  0xd5   : > { %p2862_p4 = pnand %p2860_p8, %p3861_p3 }
  0xd7   : > { %p2863_p13 = pneg %p2862_p4 }
  0xd9   : > { %p2868_p7 = pnand %p2866_p10, %p2863_p13 }
  0xdb   : > { %2871 = shalt.err (!%p2868_p7)
}
  0xdc   : > { %s2872_s13 = scalar_lea.vmem %s500_s22, 1536  ;;  %p2880_p9 = scmp.lt.s32.totalorder %s500_s22, %s500_s22 }
  0xdd   : > { %p2873_p12 = scmp.ne.s32.totalorder %s500_s22, %s2872_s13  ;;  %p2881_p11 = scmp.lt.s32.totalorder %s2872_s13, %s2872_s13 }
  0xdf   : > { %p2875_p0 = pnand %p2873_p12, %p3861_p3  ;;  %p2882_p6 = por %p2881_p11, %p2880_p9 }
  0xe1   : > { %p2876_p5 = pneg %p2875_p0 }
  0xe3   : > { %p2883_p2 = pnand %p2882_p6, %p2876_p5 }
  0xe5   : > { %2886 = shalt.err (!%p2883_p2)
}
  0xe6   : > { %2607 = dma.hbm_to_vmem [thread:$0]  (!%p3862_p1), %s3793_s12, 1536, %s500_s22, [#allocation17], %s3859_s7, %s3859_s7, %s3858_s17  }
  0xe7   : > { %s2887_s26 = scalar_lea.hbm %s3461_s11, 256  ;;  %p3863_p8 = scmp.ne.s32.totalorder %s3857_s16, 0 }
  0xe8   : > { %p2888_p3 = scmp.ne.s32.totalorder %s3461_s11, %s2887_s26  ;;  %s2892_s27 = scalar_lea.hbm %s3783_s2, 512 }
  0xe9   : > { %p2893_p13 = scmp.lt.u32.totalorder %s3461_s11, %s3783_s2  ;;  %p2894_p10 = scmp.lt.u32.totalorder %s2892_s27, %s2887_s26 }
  0xea   : > { %p2890_p2 = pnand %p2888_p3, %p3863_p8  ;;  %p2896_p12 = scmp.lt.u32.totalorder %s2887_s26, %s3461_s11 }
  0xeb   : > { %p2895_p7 = por %p2894_p10, %p2893_p13 }
  0xec   : > { %p2891_p4 = pneg %p2890_p2 }
  0xed   : > { %p2897_p0 = por %p2896_p12, %p2895_p7 }
  0xef   : > { %p2898_p1 = pnand %p2897_p0, %p2891_p4 }
  0xf1   : > { %2901 = shalt.err (!%p2898_p1)
}
  0xf2   : > { %s2902_s22 = scalar_lea.vmem %s3485_s15, 256  ;;  %s3104_s1 = smov [#allocation9]  }
  0xf3   : > { %p2903_p5 = scmp.ne.s32.totalorder %s3485_s15, %s2902_s22  ;;  %s2907_s14 = sshll.u32 %s3104_s1, 4  ;;  %s2908_s14 = int_to_ptr.vmem [resolvable:$false] %s2907_s14 }
  0xf4   : > { %s2909_s6 = scalar_lea.vmem %s2908_s14, 512  ;;  %p2910_p6 = scmp.lt.s32.totalorder %s3485_s15, %s2908_s14 }
  0xf5   : > { %p2905_p9 = pnand %p2903_p5, %p3863_p8  ;;  %p2911_p3 = scmp.lt.s32.totalorder %s2909_s6, %s2902_s22 }
  0xf7   : > { %p2906_p11 = pneg %p2905_p9  ;;  %p2912_p2 = por %p2911_p3, %p2910_p6 }
  0xf9   : > { %p2913_p13 = pnand %p2912_p2, %p2906_p11 }
  0xfb   : > { %2916 = shalt.err (!%p2913_p13)
}
  0xfc   : > { %p3864_p4 = scmp.ne.s32.totalorder %s3855_s5, 0  ;;  %s3516_s30 = scalar_lea.hbm %s3784_s3, %s3359_s23 }
  0xfd   : > { %s559_s0 = scalar_lea.vmem [#allocation10], %s3361_s4  ;;  %s3865_s28 = sand.u32 1, %s3093_s21  }
  0xfe   : > { %2614 = dma.hbm_to_vmem [thread:$0]  (!%p3864_p4), %s3461_s11, 256, %s3485_s15, %s3378_s8, %s3859_s7, %s3859_s7, %s3858_s17  }
  0xff   : > { %s566_s26 = sshll.u32 %s559_s0, 4  ;;  %s3523_s9 = scalar_lea.sflag [#allocation11], %s3865_s28  ;;  %s3519_s26 = int_to_ptr.vmem [resolvable:$true] %s566_s26 }
 0x100   : > { %s2917_s27 = scalar_lea.hbm %s3516_s30, 256  ;;  %s2922_s23 = scalar_lea.hbm %s3784_s3, 512 }
 0x101   : > { %p2918_p10 = scmp.ne.s32.totalorder %s3516_s30, %s2917_s27  ;;  %p2923_p0 = scmp.lt.u32.totalorder %s3516_s30, %s3784_s3 }
 0x102   : > { %p2924_p1 = scmp.lt.u32.totalorder %s2922_s23, %s2917_s27  ;;  %p2926_p9 = scmp.lt.u32.totalorder %s2917_s27, %s3516_s30 }
 0x103   : > { %p2920_p7 = pnand %p2918_p10, %p3863_p8 }
 0x104   : > { %p2925_p5 = por %p2924_p1, %p2923_p0 }
 0x105   : > { %p2921_p12 = pneg %p2920_p7 }
 0x106   : > { %p2927_p11 = por %p2926_p9, %p2925_p5 }
 0x108   : > { %p2928_p6 = pnand %p2927_p11, %p2921_p12 }
 0x10a   : > { %2931 = shalt.err (!%p2928_p6)
}
 0x10b   : > { %s2932_s4 = scalar_lea.vmem %s3519_s26, 256  ;;  %s3105_s29 = smov [#allocation10]  }
 0x10c   : > { %p2933_p3 = scmp.ne.s32.totalorder %s3519_s26, %s2932_s4  ;;  %s2937_s22 = sshll.u32 %s3105_s29, 4  ;;  %s2938_s22 = int_to_ptr.vmem [resolvable:$false] %s2937_s22 }
 0x10d   : > { %s2939_s1 = scalar_lea.vmem %s2938_s22, 512  ;;  %p2940_p10 = scmp.lt.s32.totalorder %s3519_s26, %s2938_s22 }
 0x10e   : > { %p2935_p2 = pnand %p2933_p3, %p3863_p8  ;;  %p2941_p7 = scmp.lt.s32.totalorder %s2939_s1, %s2932_s4 }
 0x110   : > { %p2936_p13 = pneg %p2935_p2  ;;  %p2942_p0 = por %p2941_p7, %p2940_p10 }
 0x112   : > { %p2943_p1 = pnand %p2942_p0, %p2936_p13 }
 0x114   : > { %2946 = shalt.err (!%p2943_p1)
}
 0x115   : > { %2617 = dma.hbm_to_vmem [thread:$0]  (!%p3864_p4), %s3516_s30, 256, %s3519_s26, %s3523_s9, %s3859_s7, %s3859_s7, %s3858_s17  }
 0x116   : > { %p3866_p8 = scmp.ne.s32.totalorder %s3840_s25, 0 }
 0x117   : > { %p3867_p12 = scmp.eq.s32.totalorder (!%p3866_p8), %s3215_s24, 0 }
 0x118   : > { %578 = sbr.rel (%p3866_p8) target bundleno = 881 (0x371), region = 72 }
 0x11f   : > { %3048 = dma.done.wait (%p3867_p12), [#allocation5], 16   ;;  %p3868_p5 = pmov %p3867_p12 }
 0x120   : > { %s3869_s5 = sld [smem:[#allocation35_spill]]  ;;  %s3557_s16 = sand.u32 1, %s3215_s24  }
 0x121   : > { %3050 = vsyncadd (%p3868_p5), [#allocation5], 4294967280  ;;  %s586_s14 = sand.u32 1, %s3085_s19   ;;  %s585_s25 = scalar_lea.sflag [#allocation8], %s3557_s16 }
 0x122   : > { %s3562_s6 = sshll.u32 %s586_s14, 4 }
 0x123   : > { %s588_s17 = scalar_lea.vmem [#allocation7], %s3562_s6 }
 0x126   : > { %p3870_p4 = scmp.ne.s32.totalorder %s3869_s5, 0 }
 0x128   : > { %3052 = dma.done.wait (%p3870_p4), %s585_s25, 512  }
 0x129   : > { %3054 = vsyncadd (%p3870_p4), %s585_s25, 4294966784  ;;  %s597_s7 = scalar_lea.vmem [#allocation9], %s3562_s6  ;;  %s603_s18 = scalar_lea.sflag [#allocation11], %s3557_s16 }
 0x12a   : > { %s606_s13 = scalar_lea.vmem [#allocation10], %s3562_s6 }
 0x12b   : > { %3056 = dma.done.wait (%p3870_p4), %s603_s18, 256  }
 0x12c   : > { %3058 = vsyncadd (%p3870_p4), %s603_s18, 4294967040  ;;  %p3871_p9 = pmov %p3868_p5 }
 0x12d   : > { %p3872_p11 = pmov %p3868_p5 }
 0x12e   : > { %3060 = dma.done.wait (%p3871_p9), [#allocation11], 3072  }
 0x12f   : > { %3062 = vsyncadd (%p3872_p11), [#allocation11], 4294964224  ;;  %p3873_p6 = pmov %p3868_p5 }
 0x130   : > { %p3874_p3 = pmov %p3868_p5 }
 0x131   : > { %3064 = dma.done.wait (%p3873_p6), [#allocation14], 7168  }
 0x132   : > { %3066 = vsyncadd (%p3874_p3), [#allocation14], 4294960128  ;;  %p3875_p2 = pmov %p3874_p3 }
 0x134   : > { %3068 = dma.done.wait (%p3875_p2), [#allocation17], 3072   ;;  %p3876_p13 = pmov %p3875_p2 }
 0x135   : > { %vm723_vm0 = vcmask 523264   ;;  %vm807_vm1 = vcmask 517120   ;;  %v3106_v0 = vmov 0.0   ;;  %v824_v1 = vld [vmem:[#allocation12 + $0x40] sm:$0xff]  ;;  %v825_v2 = vld [vmem:[#allocation12 + $0x48] sm:$0xff]  ;;  %v826_v3 = vld [vmem:[#allocation12 + $0x50] sm:$0xff] }
 0x136   : > { %3070 = vsyncadd (%p3876_p13), [#allocation17], 4294964224  ;;  %805 = vst.msk [vmem:[#allocation2] sm:$0xff] %vm723_vm0, %v3106_v0  ;;  %v2347_v4 = vpack.c.bf16 %v825_v2, %v824_v1  ;;  %v827_v5 = vld [vmem:[#allocation12 + $0x58] sm:$0xff]  ;;  %v828_v7 = vld [vmem:[#allocation12 + $0x60] sm:$0xff]  ;;  %s3877_s26 = sld [smem:[#allocation40_spill]] }
 0x137   : > { %806 = vst.msk [vmem:[#allocation2 + $0x8] sm:$0xff] %vm723_vm0, %v3106_v0  ;;  %1108 = vst [vmem:[#allocation3] sm:$0xff] %v3106_v0  ;;  %v2351_v6 = vpack.c.bf16 %v827_v5, %v826_v3  ;;  %v829_v8 = vld [vmem:[#allocation12 + $0x68] sm:$0xff]  ;;  %v693_v9 = vld [vmem:[%s588_s17] sm:$0xff]  ;;  %s3878_s27 = sld [smem:[#allocation41_spill]]  ;;  %s3621_s8 = scalar_lea.vmem [#allocation20], %s3562_s6 }
 0x138   : > { %1109 = vst [vmem:[#allocation3 + $0x8] sm:$0xff] %v3106_v0  ;;  %1110 = vst [vmem:[#allocation3 + $0x10] sm:$0x3] %v3106_v0  ;;  %2348 = vmatprep.subr.bf16.mxu1 %v2347_v4  ;;  %v694_v10 = vld [vmem:[%s588_s17 + $0x8] sm:$0xff]  ;;  %v2355_v15 = vpack.c.bf16 %v829_v8, %v828_v7  ;;  %v830_v16 = vld [vmem:[#allocation12 + $0x70] sm:$0xff]  ;;  %s3879_s15 = sld [smem:[#allocation42_spill]] }
 0x139   : > { %808 = vst.msk [vmem:[#allocation2 + $0x10] sm:$0x3] %vm807_vm1, %v3106_v0  ;;  %2350 = vmatpush3.bf16.msra.mxu1 %v2347_v4  ;;  %v831_v17 = vld [vmem:[#allocation12 + $0x78] sm:$0xff]  ;;  %v813_v23 = vld [vmem:[#allocation12] sm:$0xff]  ;;  %v716_v25 = vld [vmem:[#allocation15 + $0x8] sm:$0xff]  ;;  %s3880_s29 = sld [smem:[#allocation43_spill]] }
 0x13a   : > { %2352 = vmatprep.subr.bf16.mxu1 %v2351_v6  ;;  %v2359_v22 = vpack.c.bf16 %v831_v17, %v830_v16  ;;  %v715_v24 = vld [vmem:[#allocation15] sm:$0xff]  ;;  %v814_v26 = vld [vmem:[#allocation12 + $0x8] sm:$0xff]  ;;  %v717_v28 = vld [vmem:[#allocation15 + $0x10] sm:$0xff]  ;;  %vm1410_vm2 = vcmask 785408   ;;  %s3881_s22 = sld [smem:[#allocation36_spill]]  ;;  %s1657_s1 = sshll.u32 %s3621_s8, 4  ;;  %s3648_s1 = int_to_ptr.vmem [resolvable:$true] %s1657_s1 }
 0x13b   : > { %v2331_v27 = vpack.c.bf16 %v716_v25, %v715_v24  ;;  %v718_v29 = vld [vmem:[#allocation15 + $0x18] sm:$0xff]  ;;  %v719_v31 = vld [vmem:[#allocation15 + $0x20] sm:$0xff]  ;;  %v720_v32 = vld [vmem:[#allocation15 + $0x28] sm:$0xff]  ;;  %v2363_v33 = vpack.c.bf16 %v814_v26, %v813_v23  ;;  %s3651_s5 = sshll.u32 %s3215_s24, 8  ;;  %s1623_s30 = scalar_lea.sflag [#allocation21], %s3557_s16 }
 0x13c   : > { %v1940_v11 = vld [vmem:[%s3877_s26] ss:$0 sm:$0xff]  ;;  %v2335_v30 = vpack.c.bf16 %v718_v29, %v717_v28  ;;  %v815_v34 = vld [vmem:[#allocation12 + $0x10] sm:$0xff]  ;;  %v816_v35 = vld [vmem:[#allocation12 + $0x18] sm:$0xff]  ;;  %v2339_v36 = vpack.c.bf16 %v720_v32, %v719_v31  ;;  %s2947_s0 = scalar_lea.vmem %s3648_s1, 256 }
 0x13d   : > { %v1941_v12 = vld [vmem:[%s3878_s27] ss:$0 sm:$0xff]  ;;  %v702_v13 = vmul.f32 %v1940_v11, %v693_v9  ;;  %v703_v14 = vmul.f32 %v1940_v11, %v694_v10  ;;  %2354 = vmatpush3.bf16.msra.mxu1 %v2351_v6  ;;  %2332 = vmatprep.subr.bf16.mxu0 %v2331_v27  ;;  %v721_v37 = vld [vmem:[#allocation15 + $0x30] sm:$0xff]  ;;  %v722_v38 = vld [vmem:[#allocation15 + $0x38] sm:$0xff]  ;;  %v2367_v41 = vpack.c.bf16 %v816_v35, %v815_v34  ;;  %p2948_p10 = scmp.ne.s32.totalorder %s3648_s1, %s2947_s0 }
 0x13e   : > { %2356 = vmatprep.subr.bf16.mxu1 %v2355_v15  ;;  %2334 = vmatpush3.bf16.msra.mxu0 %v2331_v27  ;;  %v817_v43 = vld [vmem:[#allocation12 + $0x20] sm:$0xff]  ;;  %v818_v44 = vld [vmem:[#allocation12 + $0x28] sm:$0xff]  ;;  %v2343_v45 = vpack.c.bf16 %v722_v38, %v721_v37  ;;  %v819_v49 = vld [vmem:[#allocation12 + $0x30] sm:$0xff] }
 0x13f   : > { %v711_v18 = vadd.f32 %v1941_v12, %v702_v13  ;;  %v3601_v19 = vadd.f32 %v1941_v12, %v703_v14  ;;  %2336 = vmatprep.subr.bf16.mxu0 %v2335_v30  ;;  %v1115_v46 = vld [vmem:[#allocation13] sm:$0xff]  ;;  %v1116_v47 = vld [vmem:[#allocation13 + $0x8] sm:$0xff]  ;;  %v2371_v48 = vpack.c.bf16 %v818_v44, %v817_v43  ;;  %v820_v50 = vld [vmem:[#allocation12 + $0x38] sm:$0xff] }
 0x140   : > { %v2427_v51 = vpack.c.bf16 %v1116_v47, %v1115_v46  ;;  %v1117_v52 = vld [vmem:[#allocation13 + $0x10] sm:$0xff]  ;;  %v1118_v53 = vld [vmem:[#allocation13 + $0x18] sm:$0xff]  ;;  %v2375_v54 = vpack.c.bf16 %v820_v50, %v819_v49  ;;  %v997_v55 = vld [vmem:[#allocation12 + $0x80] sm:$0xff]  ;;  %p3883_p7 = scmp.ne.s32.totalorder %s3881_s22, 0 }
 0x141   : > { %v713_v20 = vmax.f32 %v711_v18, 0.0  ;;  %v714_v21 = vmax.f32 %v3601_v19, 0.0  ;;  %2358 = vmatpush3.bf16.msra.mxu1 %v2355_v15  ;;  %v998_v56 = vld [vmem:[#allocation12 + $0x88] sm:$0xff]  ;;  %v2431_v57 = vpack.c.bf16 %v1118_v53, %v1117_v52  ;;  %v1119_v58 = vld [vmem:[#allocation13 + $0x20] sm:$0xff]  ;;  %v999_v61 = vld [vmem:[#allocation12 + $0x90] sm:$0xff] }
 0x142   : > { %2360 = vmatprep.subr.bf16.mxu1 %v2359_v22  ;;  %2338 = vmatpush3.bf16.msra.mxu0 %v2335_v30  ;;  %v1120_v59 = vld [vmem:[#allocation13 + $0x28] sm:$0xff]  ;;  %v2379_v60 = vpack.c.bf16 %v998_v56, %v997_v55  ;;  %v1000_v62 = vld [vmem:[#allocation12 + $0x98] sm:$0xff]  ;;  %v1121_v0 = vld [vmem:[#allocation13 + $0x30] sm:$0xff]  ;;  %v3107_v55 = vmov 0   ;;  %p2949_p0 = pnand %p2948_p10, %p3883_p7 }
 0x143   : > { %809 = vst.msk [vmem:[#allocation2 + $0x1] sm:$0xff] %vm723_vm0, %v713_v20  ;;  %810 = vst.msk [vmem:[#allocation2 + $0x9] sm:$0xff] %vm723_vm0, %v714_v21  ;;  %2112 = vmatprep.mubr.msk.f32.mxu0 %vm723_vm0, %v713_v20  ;;  %2340 = vmatprep.subr.bf16.mxu0 %v2339_v36  ;;  %v2435_v63 = vpack.c.bf16 %v1120_v59, %v1119_v58  ;;  %v1122_v1 = vld [vmem:[#allocation13 + $0x38] sm:$0xff]  ;;  %v2383_v3 = vpack.c.bf16 %v1000_v62, %v999_v61  ;;  %v1001_v5 = vld [vmem:[#allocation12 + $0xa0] sm:$0xff] }
 0x144   : > { %v1002_v6 = vld [vmem:[#allocation12 + $0xa8] sm:$0xff]  ;;  %v2439_v7 = vpack.c.bf16 %v1122_v1, %v1121_v0  ;;  %v1003_v9 = vld [vmem:[#allocation12 + $0xb0] sm:$0xff]  ;;  %v1004_v10 = vld [vmem:[#allocation12 + $0xb8] sm:$0xff]  ;;  %2687 = vset.pattern.permute.xlu0 %v3107_v55  ;;  %p2950_p1 = pneg %p2949_p0 }
 0x145   : > { %2362 = vmatpush3.bf16.msra.mxu1 %v2359_v22  ;;  %v2387_v8 = vpack.c.bf16 %v1002_v6, %v1001_v5  ;;  %v2391_v11 = vpack.c.bf16 %v1004_v10, %v1003_v9  ;;  %v1134_v12 = vld [vmem:[#allocation13 + $0x80] sm:$0xff]  ;;  %v1135_v13 = vld [vmem:[#allocation13 + $0x88] sm:$0xff]  ;;  %v1136_v15 = vld [vmem:[#allocation13 + $0x90] sm:$0xff] }
 0x146   : > { %2364 = vmatprep.subr.bf16.mxu1 %v2363_v33  ;;  %2342 = vmatpush3.bf16.msra.mxu0 %v2339_v36  ;;  %v2395_v14 = vpack.c.bf16 %v1135_v13, %v1134_v12  ;;  %v1137_v16 = vld [vmem:[#allocation13 + $0x98] sm:$0xff]  ;;  %v1138_v19 = vld [vmem:[#allocation13 + $0xa0] sm:$0xff]  ;;  %v1139_v20 = vld [vmem:[#allocation13 + $0xa8] sm:$0xff] }
 0x147   : > { %2344 = vmatprep.subr.bf16.mxu0 %v2343_v45  ;;  %v2399_v18 = vpack.c.bf16 %v1137_v16, %v1136_v15  ;;  %v1140_v22 = vld [vmem:[#allocation13 + $0xb0] sm:$0xff]  ;;  %v1141_v23 = vld [vmem:[#allocation13 + $0xb8] sm:$0xff]  ;;  %v1142_v25 = vld [vmem:[#allocation13 + $0xc0] sm:$0xff] }
 0x148   : > { %v2407_v24 = vpack.c.bf16 %v1141_v23, %v1140_v22  ;;  %v1143_v26 = vld [vmem:[#allocation13 + $0xc8] sm:$0xff]  ;;  %v1144_v28 = vld [vmem:[#allocation13 + $0xd0] sm:$0xff]  ;;  %v1145_v29 = vld [vmem:[#allocation13 + $0xd8] sm:$0xff] }
 0x149   : > { %v2411_v27 = vpack.c.bf16 %v1143_v26, %v1142_v25  ;;  %v2415_v30 = vpack.c.bf16 %v1145_v29, %v1144_v28  ;;  %v1123_v31 = vld [vmem:[#allocation13 + $0x40] sm:$0xff]  ;;  %v1124_v32 = vld [vmem:[#allocation13 + $0x48] sm:$0xff]  ;;  %v1125_v37 = vld [vmem:[#allocation13 + $0x50] sm:$0xff] }
 0x14a   : > { %v821_v39 = vld [vmem:[#allocation2 + $0x1] sm:$0xff]  ;;  %v822_v40 = vld [vmem:[#allocation2 + $0x9] sm:$0xff]  ;;  %2346 = vmatpush3.bf16.msra.mxu0 %v2343_v45  ;;  %v1146_v34 = vld [vmem:[#allocation13 + $0xe0] sm:$0xff] }
 0x14b   : > { %v811_v42 = vld [vmem:[#allocation2] sm:$0xff]  ;;  %2131 = vmatprep.mubr.msk.f32.mxu1 %vm723_vm0, %v821_v39  ;;  %2428 = vmatprep.subr.bf16.mxu0 %v2427_v51  ;;  %v812_v2 = vld [vmem:[#allocation2 + $0x8] sm:$0xff]  ;;  %v1127_v43 = vld [vmem:[#allocation13 + $0x60] sm:$0xff] }
 0x14c   : > { %2132 = vmatmul.mubr.msk.f32.vlgmr.msra.gmra.mrb[0].mxu1 %vm723_vm0, %v822_v40  ;;  %v994_v4 = vld [vmem:[#allocation2 + $0x2] sm:$0xff]  ;;  %v995_v17 = vld [vmem:[#allocation2 + $0xa] sm:$0xff]  ;;  %v1147_v35 = vld [vmem:[#allocation13 + $0xe8] sm:$0xff] }
 0x14d   : > { %2366 = vmatpush3.bf16.msra.mxu1 %v2363_v33  ;;  %2150 = vmatprep.mubr.msk.f32.mxu1 %vm723_vm0, %v811_v42  ;;  %v2443_v33 = vpack.c.bf16 %v1124_v32, %v1123_v31  ;;  %v2419_v36 = vpack.c.bf16 %v1147_v35, %v1146_v34  ;;  %v1126_v38 = vld [vmem:[#allocation13 + $0x58] sm:$0xff]  ;;  %v1148_v40 = vld [vmem:[#allocation13 + $0xf0] sm:$0xff]  ;;  %v1128_v44 = vld [vmem:[#allocation13 + $0x68] sm:$0xff] }
 0x14e   : > { %2368 = vmatprep.subr.bf16.mxu1 %v2367_v41  ;;  %2113 = vmatmul.mubr.msk.f32.vlgmr.msra.gmra.mrb[0].mxu0 %vm723_vm0, %v714_v21  ;;  %v2403_v21 = vpack.c.bf16 %v1139_v20, %v1138_v19  ;;  %v2447_v39 = vpack.c.bf16 %v1126_v38, %v1125_v37  ;;  %v2451_v45 = vpack.c.bf16 %v1128_v44, %v1127_v43  ;;  %v1129_v46 = vld [vmem:[#allocation13 + $0x70] sm:$0xff]  ;;  %v1130_v47 = vld [vmem:[#allocation13 + $0x78] sm:$0xff]  ;;  %v1303_v49 = vld [vmem:[#allocation13 + $0x100] sm:$0xff] }
 0x14f   : > { %2430 = vmatpush3.bf16.msra.mxu0 %v2427_v51  ;;  %v1304_v50 = vld [vmem:[#allocation13 + $0x108] sm:$0xff]  ;;  %v1398_v52 = vld [vmem:[#allocation16] sm:$0xff]  ;;  %v1956_v56 = vld [vmem:[#allocation4] ss:$0 sm:$0xff] }
 0x150   : > { %2432 = vmatprep.subr.bf16.mxu0 %v2431_v57  ;;  %v2459_v51 = vpack.c.bf16 %v1304_v50, %v1303_v49  ;;  %v1399_v53 = vld [vmem:[#allocation16 + $0x8] sm:$0xff]  ;;  %1594 = vperm.xlu0 %2687, %v1956_v56   ;;  %v1401_v5 = vld [vmem:[#allocation16 + $0x18] sm:$0xff]  ;;  %v1396_v9 = vld [vmem:[%s597_s7] sm:$0xff] }
 0x151   : > { %2370 = vmatpush3.bf16.msra.mxu1 %v2367_v41  ;;  %v1149_v41 = vld [vmem:[#allocation13 + $0xf8] sm:$0xff]  ;;  %v1951_v62 = vld [vmem:[%s3880_s29] ss:$0 sm:$0xff]  ;;  %v1402_v10 = vld [vmem:[#allocation16 + $0x20] sm:$0xff] }
 0x152   : > { %2372 = vmatprep.subr.bf16.mxu1 %v2371_v48  ;;  %v2423_v42 = vpack.c.bf16 %v1149_v41, %v1148_v40  ;;  %v1305_v13 = vld [vmem:[#allocation13 + $0x110] sm:$0xff]  ;;  %v1405_v16 = vld [vmem:[#allocation16 + $0x38] sm:$0xff]  ;;  %v1307_v20 = vld [vmem:[#allocation13 + $0x120] sm:$0xff] }
 0x153   : > { %2434 = vmatpush3.bf16.msra.mxu0 %v2431_v57  ;;  %v3108_v57 = vmov 1   ;;  %v1404_v15 = vld [vmem:[#allocation16 + $0x30] sm:$0xff]  ;;  %v1407_v25 = vld [vmem:[#allocation16 + $0x48] sm:$0xff]  ;;  %v1310_v28 = vld [vmem:[#allocation13 + $0x138] sm:$0xff] }
 0x154   : > { %2436 = vmatprep.subr.bf16.mxu0 %v2435_v63  ;;  %2688 = vset.pattern.permute.xlu0 %v3108_v57  ;;  %v2503_v22 = vpack.c.bf16 %v1405_v16, %v1404_v15  ;;  %v1409_v31 = vld [vmem:[#allocation16 + $0x58] sm:$0xff]  ;;  %v1312_v34 = vld [vmem:[#allocation13 + $0x148] sm:$0xff]  ;;  %v1313_v37 = vld [vmem:[#allocation13 + $0x150] sm:$0xff] }
 0x155   : > { %2374 = vmatpush3.bf16.msra.mxu1 %v2371_v48  ;;  %v2455_v48 = vpack.c.bf16 %v1130_v47, %v1129_v46  ;;  %1602 = vperm.xlu0 %2688, %v1956_v56   ;;  %v1314_v38 = vld [vmem:[#allocation13 + $0x158] sm:$0xff]  ;;  %v1315_v41 = vld [vmem:[#allocation13 + $0x160] sm:$0xff]  ;;  %v1317_v44 = vld [vmem:[#allocation13 + $0x170] sm:$0xff] }
 0x156   : > { %2376 = vmatprep.subr.bf16.mxu1 %v2375_v54  ;;  %v1397_v40 = vld [vmem:[%s597_s7 + $0x8] sm:$0xff]  ;;  %v1494_v47 = vld [vmem:[#allocation18] sm:$0xff]  ;;  %v1496_v50 = vld [vmem:[#allocation18 + $0x10] sm:$0xff]  ;;  %s3882_s7 = sld [smem:[#allocation48_spill]] }
 0x157   : > { %2438 = vmatpush3.bf16.msra.mxu0 %v2435_v63  ;;  %v1498_v55 = vld [vmem:[#allocation18 + $0x20] sm:$0xff]  ;;  %v1499_v56 = vld [vmem:[#allocation18 + $0x28] sm:$0xff] }
 0x158   : > { %2440 = vmatprep.subr.bf16.mxu0 %v2439_v7  ;;  %v2523_v57 = vpack.c.bf16 %v1499_v56, %v1498_v55 }
 0x159   : > { %2378 = vmatpush3.bf16.msra.mxu1 %v2375_v54  ;;  %v2491_v54 = vpack.c.bf16 %v1399_v53, %v1398_v52  ;;  %v1492_v53 = vld [vmem:[%s606_s13] sm:$0xff] }
 0x15a   : > { %2380 = vmatprep.subr.bf16.mxu1 %v2379_v60 }
 0x15b   : > { %2442 = vmatpush3.bf16.msra.mxu0 %v2439_v7 }
 0x15c   : > { %2151 = vmatmul.mubr.msk.f32.vlgmr.msra.gmra.mrb[0].mxu1 %vm723_vm0, %v812_v2  ;;  %2444 = vmatprep.subr.bf16.mxu0 %v2443_v33  ;;  %s3657_s18 = scalar_lea.hbm %s3882_s7, %s3651_s5 }
 0x15d   : > { %2382 = vmatpush3.bf16.msra.mxu1 %v2379_v60  ;;  %2169 = vmatprep.mubr.msk.f32.mxu1 %vm723_vm0, %v994_v4  ;;  %v1950_v60 = vld [vmem:[%s3879_s15] ss:$0 sm:$0xff]  ;;  %v1400_v4 = vld [vmem:[#allocation16 + $0x10] sm:$0xff] }
 0x15e   : > { %2384 = vmatprep.subr.bf16.mxu1 %v2383_v3 }
 0x15f   : > { %2446 = vmatpush3.bf16.msra.mxu0 %v2443_v33  ;;  %v1311_v33 = vld [vmem:[#allocation13 + $0x140] sm:$0xff] }
 0x160   : > { %2448 = vmatprep.subr.bf16.mxu0 %v2447_v39 }
 0x161   : > { %2386 = vmatpush3.bf16.msra.mxu1 %v2383_v3 }
 0x162   : > { %2388 = vmatprep.subr.bf16.mxu1 %v2387_v8 }
 0x163   : > { %2450 = vmatpush3.bf16.msra.mxu0 %v2447_v39  ;;  %v2479_v39 = vpack.c.bf16 %v1314_v38, %v1313_v37 }
 0x164   : > { %2452 = vmatprep.subr.bf16.mxu0 %v2451_v45 }
 0x165   : > { %2390 = vmatpush3.bf16.msra.mxu1 %v2387_v8  ;;  %v2495_v8 = vpack.c.bf16 %v1401_v5, %v1400_v4  ;;  %v1493_v5 = vld [vmem:[%s606_s13 + $0x8] sm:$0xff]  ;;  %s3109_s13 = smov [#allocation20]  }
 0x166   : > { %2392 = vmatprep.subr.bf16.mxu1 %v2391_v11  ;;  %s2951_s26 = sshll.u32 %s3109_s13, 4  ;;  %s2952_s26 = int_to_ptr.vmem [resolvable:$false] %s2951_s26 }
 0x167   : > { %2454 = vmatpush3.bf16.msra.mxu0 %v2451_v45  ;;  %v1318_v45 = vld [vmem:[#allocation13 + $0x178] sm:$0xff]  ;;  %s2953_s28 = scalar_lea.vmem %s2952_s26, 512  ;;  %p2954_p8 = scmp.lt.s32.totalorder %s3648_s1, %s2952_s26 }
 0x168   : > { %2456 = vmatprep.subr.bf16.mxu0 %v2455_v48  ;;  %v2487_v46 = vpack.c.bf16 %v1318_v45, %v1317_v44  ;;  %p2955_p12 = scmp.lt.s32.totalorder %s2953_s28, %s2947_s0 }
 0x169   : > { %2394 = vmatpush3.bf16.msra.mxu1 %v2391_v11  ;;  %v1403_v11 = vld [vmem:[#allocation16 + $0x28] sm:$0xff] }
 0x16a   : > { %2396 = vmatprep.subr.bf16.mxu1 %v2395_v14  ;;  %v2499_v12 = vpack.c.bf16 %v1403_v11, %v1402_v10  ;;  %p2956_p5 = por %p2955_p12, %p2954_p8 }
 0x16b   : > { %2458 = vmatpush3.bf16.msra.mxu0 %v2455_v48  ;;  %v1495_v48 = vld [vmem:[#allocation18 + $0x8] sm:$0xff] }
 0x16c   : > { %2170 = vmatmul.mubr.msk.f32.vlgmr.msra.gmra.mrb[0].mxu1 %vm723_vm0, %v995_v17  ;;  %2460 = vmatprep.subr.bf16.mxu0 %v2459_v51  ;;  %v2515_v49 = vpack.c.bf16 %v1495_v48, %v1494_v47  ;;  %p2957_p4 = pnand %p2956_p5, %p2950_p1 }
 0x16d   : > { %2398 = vmatpush3.bf16.msra.mxu1 %v2395_v14  ;;  %v1306_v14 = vld [vmem:[#allocation13 + $0x118] sm:$0xff] }
 0x16e   : > { %2400 = vmatprep.subr.bf16.mxu1 %v2399_v18  ;;  %v2463_v19 = vpack.c.bf16 %v1306_v14, %v1305_v13 }
 0x171   : > { %2402 = vmatpush3.bf16.msra.mxu1 %v2399_v18 }
 0x172   : > { %2404 = vmatprep.subr.bf16.mxu1 %v2403_v21 }
 0x175   : > { %2406 = vmatpush3.bf16.msra.mxu1 %v2403_v21  ;;  %v1308_v21 = vld [vmem:[#allocation13 + $0x128] sm:$0xff] }
 0x176   : > { %2408 = vmatprep.subr.bf16.mxu1 %v2407_v24  ;;  %v2467_v26 = vpack.c.bf16 %v1308_v21, %v1307_v20 }
 0x179   : > { %2410 = vmatpush3.bf16.msra.mxu1 %v2407_v24  ;;  %v1406_v24 = vld [vmem:[#allocation16 + $0x40] sm:$0xff] }
 0x17a   : > { %2412 = vmatprep.subr.bf16.mxu1 %v2411_v27  ;;  %v2507_v29 = vpack.c.bf16 %v1407_v25, %v1406_v24 }
 0x17d   : > { %2414 = vmatpush3.bf16.msra.mxu1 %v2411_v27  ;;  %v1309_v27 = vld [vmem:[#allocation13 + $0x130] sm:$0xff] }
 0x17e   : > { %2416 = vmatprep.subr.bf16.mxu1 %v2415_v30  ;;  %v2471_v32 = vpack.c.bf16 %v1310_v28, %v1309_v27 }
 0x181   : > { %2418 = vmatpush3.bf16.msra.mxu1 %v2415_v30  ;;  %v1408_v30 = vld [vmem:[#allocation16 + $0x50] sm:$0xff] }
 0x182   : > { %2420 = vmatprep.subr.bf16.mxu1 %v2419_v36  ;;  %v2511_v35 = vpack.c.bf16 %v1409_v31, %v1408_v30 }
 0x185   : > { %2422 = vmatpush3.bf16.msra.mxu1 %v2419_v36  ;;  %v2475_v36 = vpack.c.bf16 %v1312_v34, %v1311_v33 }
 0x186   : > { %2424 = vmatprep.subr.bf16.mxu1 %v2423_v42 }
 0x189   : > { %2426 = vmatpush3.bf16.msra.mxu1 %v2423_v42  ;;  %v1316_v42 = vld [vmem:[#allocation13 + $0x168] sm:$0xff] }
 0x18a   : > { %2492 = vmatprep.subr.bf16.mxu1 %v2491_v54  ;;  %v2483_v43 = vpack.c.bf16 %v1316_v42, %v1315_v41 }
 0x221   : > { %v3618_v58 = vpop.f32.mrb[0].mxu0 }
 0x222   : > { %1614 = vst [vmem:[%s3621_s8 + $0x8] sm:$0xff] %v3618_v58  ;;  %v3625_v59 = vpop.f32.mrb[1].mxu0 }
 0x223   : > { %1613 = vst [vmem:[%s3621_s8] sm:$0xff] %v3625_v59 }
 0x23f   : > { %v2171_v61 = vpop.f32.mrb[0].mxu1 }
 0x240   : > { %v1096_v63 = vmul.f32 %v2171_v61, %v1950_v60  ;;  %v1077_v0 = vpop.f32.mrb[1].mxu1  ;;  %v1501_v61 = vld [vmem:[#allocation18 + $0x38] sm:$0xff] }
 0x241   : > { %v1095_v1 = vmul.f32 %v1950_v60, %v1077_v0  ;;  %v1500_v60 = vld [vmem:[#allocation18 + $0x30] sm:$0xff]  ;;  %v1503_v0 = vld [vmem:[#allocation18 + $0x48] sm:$0xff] }
 0x242   : > { %v1105_v2 = vadd.f32 %v1951_v62, %v1096_v63  ;;  %v1502_v63 = vld [vmem:[#allocation18 + $0x40] sm:$0xff] }
 0x243   : > { %v1104_v3 = vadd.f32 %v1951_v62, %v1095_v1  ;;  %v2527_v62 = vpack.c.bf16 %v1501_v61, %v1500_v60  ;;  %v2531_v1 = vpack.c.bf16 %v1503_v0, %v1502_v63 }
 0x244   : > { %v1107_v6 = vmax.f32 %v1105_v2, 0.0  ;;  %v1504_v2 = vld [vmem:[#allocation18 + $0x50] sm:$0xff] }
 0x245   : > { %v1106_v7 = vmax.f32 %v1104_v3, 0.0  ;;  %v1505_v3 = vld [vmem:[#allocation18 + $0x58] sm:$0xff] }
 0x246   : > { %1112 = vst [vmem:[#allocation3 + $0x9] sm:$0xff] %v1107_v6  ;;  %v2535_v4 = vpack.c.bf16 %v1505_v3, %v1504_v2 }
 0x247   : > { %1111 = vst [vmem:[#allocation3 + $0x1] sm:$0xff] %v1106_v7  ;;  %2204 = vmatprep.mubr.f32.mxu1 %v1106_v7 }
 0x248   : > { %2205 = vmatmul.mubr.f32.vlgmr.msra.gmra.mrb[2].mxu1 %v1107_v6 }
 0x249   : > { %2494 = vmatpush3.bf16.msra.mxu1 %v2491_v54  ;;  %2301 = vmatprep.mubr.msk.f32.mxu1 %vm1410_vm2, %v1396_v9 }
 0x24a   : > { %2496 = vmatprep.subr.bf16.mxu1 %v2495_v8 }
 0x24d   : > { %2498 = vmatpush3.bf16.msra.mxu1 %v2495_v8  ;;  %v1301_v54 = vld [vmem:[#allocation3 + $0xa] sm:$0xff] }
 0x24e   : > { %v1113_v17 = vld [vmem:[#allocation3] sm:$0xff]  ;;  %v1114_v18 = vld [vmem:[#allocation3 + $0x8] sm:$0xff]  ;;  %2500 = vmatprep.subr.bf16.mxu1 %v2499_v12 }
 0x24f   : > { %2239 = vmatprep.mubr.f32.mxu0 %v1113_v17  ;;  %v1300_v23 = vld [vmem:[#allocation3 + $0x2] sm:$0xff] }
 0x250   : > { %2240 = vmatmul.mubr.f32.vlgmr.msra.gmra.mrb[2].mxu0 %v1114_v18 }
 0x251   : > { %2462 = vmatpush3.bf16.msra.mxu0 %v2459_v51  ;;  %2274 = vmatprep.mubr.f32.mxu0 %v1300_v23  ;;  %v1497_v51 = vld [vmem:[#allocation18 + $0x18] sm:$0xff] }
 0x252   : > { %2464 = vmatprep.subr.bf16.mxu0 %v2463_v19  ;;  %2502 = vmatpush3.bf16.msra.mxu1 %v2499_v12  ;;  %v2519_v52 = vpack.c.bf16 %v1497_v51, %v1496_v50 }
 0x253   : > { %2504 = vmatprep.subr.bf16.mxu1 %v2503_v22 }
 0x255   : > { %2466 = vmatpush3.bf16.msra.mxu0 %v2463_v19 }
 0x256   : > { %2468 = vmatprep.subr.bf16.mxu0 %v2467_v26  ;;  %2506 = vmatpush3.bf16.msra.mxu1 %v2503_v22 }
 0x257   : > { %2508 = vmatprep.subr.bf16.mxu1 %v2507_v29 }
 0x259   : > { %2470 = vmatpush3.bf16.msra.mxu0 %v2467_v26 }
 0x25a   : > { %2472 = vmatprep.subr.bf16.mxu0 %v2471_v32  ;;  %2510 = vmatpush3.bf16.msra.mxu1 %v2507_v29 }
 0x25b   : > { %2512 = vmatprep.subr.bf16.mxu1 %v2511_v35 }
 0x25d   : > { %2474 = vmatpush3.bf16.msra.mxu0 %v2471_v32 }
 0x25e   : > { %2476 = vmatprep.subr.bf16.mxu0 %v2475_v36  ;;  %2514 = vmatpush3.bf16.msra.mxu1 %v2511_v35 }
 0x261   : > { %2478 = vmatpush3.bf16.msra.mxu0 %v2475_v36  ;;  %2302 = vmatmul.mubr.msk.f32.vlgmr.msra.gmra.mrb[4].mxu1 %vm1410_vm2, %v1397_v40 }
 0x262   : > { %2480 = vmatprep.subr.bf16.mxu0 %v2479_v39 }
 0x265   : > { %2482 = vmatpush3.bf16.msra.mxu0 %v2479_v39 }
 0x266   : > { %2484 = vmatprep.subr.bf16.mxu0 %v2483_v43 }
 0x269   : > { %2486 = vmatpush3.bf16.msra.mxu0 %v2483_v43 }
 0x26a   : > { %2488 = vmatprep.subr.bf16.mxu0 %v2487_v46 }
 0x26d   : > { %2490 = vmatpush3.bf16.msra.mxu0 %v2487_v46 }
 0x26e   : > { %2516 = vmatprep.subr.bf16.mxu0 %v2515_v49 }
 0x270   : > { %2275 = vmatmul.mubr.f32.vlgmr.msra.gmra.mrb[2].mxu0 %v1301_v54 }
 0x271   : > { %2518 = vmatpush3.bf16.msra.mxu0 %v2515_v49  ;;  %2328 = vmatprep.mubr.msk.f32.mxu0 %vm1410_vm2, %v1492_v53 }
 0x272   : > { %2520 = vmatprep.subr.bf16.mxu0 %v2519_v52 }
 0x275   : > { %2522 = vmatpush3.bf16.msra.mxu0 %v2519_v52 }
 0x276   : > { %2524 = vmatprep.subr.bf16.mxu0 %v2523_v57 }
 0x279   : > { %2526 = vmatpush3.bf16.msra.mxu0 %v2523_v57 }
 0x27a   : > { %2528 = vmatprep.subr.bf16.mxu0 %v2527_v62 }
 0x27d   : > { %2530 = vmatpush3.bf16.msra.mxu0 %v2527_v62 }
 0x27e   : > { %2532 = vmatprep.subr.bf16.mxu0 %v2531_v1 }
 0x281   : > { %2534 = vmatpush3.bf16.msra.mxu0 %v2531_v1 }
 0x282   : > { %2536 = vmatprep.subr.bf16.mxu0 %v2535_v4 }
 0x285   : > { %2538 = vmatpush3.bf16.msra.mxu0 %v2535_v4 }
 0x288   : > { %2329 = vmatmul.mubr.msk.f32.vlgmr.msra.gmra.mrb[2].mxu0 %vm1410_vm2, %v1493_v5 }
 0x289   : > { %2960 = shalt.err (!%p2957_p4)
}
 0x28a   : > { %s2961_s24 = scalar_lea.hbm %s3657_s18, 256  ;;  %s2965_s8 = scalar_lea.hbm %s3882_s7, 512 }
 0x28b   : > { %p2962_p9 = scmp.ne.s32.totalorder %s3657_s18, %s2961_s24  ;;  %p2966_p3 = scmp.lt.u32.totalorder %s3657_s18, %s3882_s7 }
 0x28c   : > { %p2967_p2 = scmp.lt.u32.totalorder %s2965_s8, %s2961_s24  ;;  %p2969_p10 = scmp.lt.u32.totalorder %s2961_s24, %s3657_s18 }
 0x28d   : > { %p2963_p11 = pnand %p2962_p9, %p3883_p7 }
 0x28e   : > { %p2968_p13 = por %p2967_p2, %p2966_p3 }
 0x28f   : > { %p2964_p6 = pneg %p2963_p11 }
 0x290   : > { %p2970_p0 = por %p2969_p10, %p2968_p13 }
 0x292   : > { %p2971_p1 = pnand %p2970_p0, %p2964_p6 }
 0x294   : > { %2974 = shalt.err (!%p2971_p1)
}
 0x295   : > { %s3110_s15 = smov 128   ;;  %s3111_s20 = smov 8  }
 0x296   : > { %2584 = dma.vmem_to_hbm [thread:$0]  (%p3883_p7), %s3648_s1, 256, %s3657_s18, %s1623_s30, %s3110_s15, %s3110_s15, %s3111_s20  }
 0x297   : > { %s692_s4 = scalar_lea.vmem [#allocation22], %s3562_s6  ;;  %s3884_s0 = sld [smem:[#allocation49_spill]] }
 0x298   : > { %s1673_s29 = sshll.u32 %s692_s4, 4  ;;  %s3112_s1 = smov [#allocation22]   ;;  %s3687_s29 = int_to_ptr.vmem [resolvable:$true] %s1673_s29 }
 0x299   : > { %s2975_s26 = scalar_lea.vmem %s3687_s29, 256  ;;  %s2979_s18 = sshll.u32 %s3112_s1, 4  ;;  %s2980_s18 = int_to_ptr.vmem [resolvable:$false] %s2979_s18 }
 0x29a   : > { %p2976_p8 = scmp.ne.s32.totalorder %s3687_s29, %s2975_s26  ;;  %s2981_s28 = scalar_lea.vmem %s2980_s18, 512 }
 0x29b   : > { %p2982_p4 = scmp.lt.s32.totalorder %s3687_s29, %s2980_s18  ;;  %p2983_p9 = scmp.lt.s32.totalorder %s2981_s28, %s2975_s26 }
 0x29c   : > { %p2977_p12 = pnand %p2976_p8, %p3883_p7 }
 0x29d   : > { %s3693_s13 = scalar_lea.hbm %s3884_s0, %s3651_s5  ;;  %p2984_p11 = por %p2983_p9, %p2982_p4 }
 0x29e   : > { %p2978_p5 = pneg %p2977_p12 }
 0x2a0   : > { %p2985_p6 = pnand %p2984_p11, %p2978_p5 }
 0x31b   : > { %v2206_v6 = vpop.f32.mrb[2].mxu1 }
 0x31c   : > { %v1216_v7 = vpop.f32.mrb[3].mxu1 }
 0x334   : > { %v2303_v8 = vpop.f32.mrb[4].mxu1 }
 0x335   : > { %1616 = vst [vmem:[%s692_s4 + $0x8] sm:$0xff] %v2303_v8  ;;  %v1483_v9 = vpop.f32.mrb[5].mxu1 }
 0x336   : > { %1615 = vst [vmem:[%s692_s4] sm:$0xff] %v1483_v9 }
 0x337   : > { %2988 = shalt.err (!%p2985_p6)
}
 0x338   : > { %s2989_s24 = scalar_lea.hbm %s3693_s13, 256  ;;  %s2993_s8 = scalar_lea.hbm %s3884_s0, 512 }
 0x339   : > { %p2990_p3 = scmp.ne.s32.totalorder %s3693_s13, %s2989_s24  ;;  %p2994_p10 = scmp.lt.u32.totalorder %s3693_s13, %s3884_s0 }
 0x33a   : > { %p2995_p0 = scmp.lt.u32.totalorder %s2993_s8, %s2989_s24  ;;  %p2997_p8 = scmp.lt.u32.totalorder %s2989_s24, %s3693_s13 }
 0x33b   : > { %p2991_p2 = pnand %p2990_p3, %p3883_p7 }
 0x33c   : > { %p2996_p1 = por %p2995_p0, %p2994_p10 }
 0x33d   : > { %p2992_p13 = pneg %p2991_p2 }
 0x33e   : > { %p2998_p12 = por %p2997_p8, %p2996_p1 }
 0x340   : > { %p2999_p5 = pnand %p2998_p12, %p2992_p13 }
 0x342   : > { %3002 = shalt.err (!%p2999_p5)
}
 0x343   : > { %2585 = dma.vmem_to_hbm [thread:$0]  (%p3883_p7), %s3687_s29, 256, %s3693_s13, %s1623_s30, %s3110_s15, %s3110_s15, %s3111_s20   ;;  %v1595_v10 = vpop.permute.xlu0 %1594 }
 0x344   : > { %v1598_v13 = vmul.f32 %v3618_v58, %v1595_v10  ;;  %v1597_v17 = vmul.f32 %v1595_v10, %v3625_v59  ;;  %s678_s4 = scalar_lea.vmem [#allocation19], %s3562_s6  ;;  %s3885_s25 = sld [smem:[#allocation47_spill]] }
 0x345   : > { %s1641_s16 = sshll.u32 %s678_s4, 4  ;;  %s3734_s6 = scalar_lea.sflag [#allocation6], %s586_s14  ;;  %s3724_s16 = int_to_ptr.vmem [resolvable:$true] %s1641_s16 }
 0x346   : > { %s3003_s13 = scalar_lea.vmem %s3724_s16, 256  ;;  %s3113_s26 = smov [#allocation19]  }
 0x347   : > { %v1603_v11 = vpop.permute.xlu0 %1602  ;;  %p3004_p4 = scmp.ne.s32.totalorder %s3724_s16, %s3003_s13  ;;  %s3007_s1 = sshll.u32 %s3113_s26, 4  ;;  %s3008_s1 = int_to_ptr.vmem [resolvable:$false] %s3007_s1 }
 0x348   : > { %v1606_v16 = vmul.f32 %v2303_v8, %v1603_v11  ;;  %v1605_v19 = vmul.f32 %v1603_v11, %v1483_v9  ;;  %s3009_s18 = scalar_lea.vmem %s3008_s1, 512  ;;  %p3010_p6 = scmp.lt.s32.totalorder %s3724_s16, %s3008_s1 }
 0x349   : > { %p3005_p9 = pnand %p3004_p4, %p3883_p7  ;;  %p3011_p3 = scmp.lt.s32.totalorder %s3009_s18, %s3003_s13 }
 0x34a   : > { %s3730_s17 = scalar_lea.hbm %s3885_s25, %s3651_s5 }
 0x34b   : > { %p3006_p11 = pneg %p3005_p9  ;;  %p3012_p2 = por %p3011_p3, %p3010_p6 }
 0x34d   : > { %p3013_p13 = pnand %p3012_p2, %p3006_p11 }
 0x35b   : > { %v2330_v12 = vpop.f32.mrb[2].mxu0 }
 0x35c   : > { %v2539_v14 = vadd.f32 %v2330_v12, %v2206_v6  ;;  %v1578_v15 = vpop.f32.mrb[3].mxu0 }
 0x35d   : > { %v2542_v18 = vadd.f32 %v1578_v15, %v1216_v7 }
 0x35e   : > { %v2540_v20 = vadd.f32 %v2539_v14, %v1598_v13 }
 0x35f   : > { %v2543_v21 = vadd.f32 %v2542_v18, %v1597_v17 }
 0x360   : > { %v2541_v22 = vadd.f32 %v2540_v20, %v1606_v16 }
 0x361   : > { %v2544_v58 = vadd.f32 %v2543_v21, %v1605_v19 }
 0x362   : > { %1612 = vst [vmem:[%s678_s4 + $0x8] sm:$0xff] %v2541_v22 }
 0x363   : > { %1611 = vst [vmem:[%s678_s4] sm:$0xff] %v2544_v58 }
 0x364   : > { %3016 = shalt.err (!%p3013_p13)
}
 0x365   : > { %s3017_s14 = scalar_lea.hbm %s3730_s17, 256  ;;  %s3021_s24 = scalar_lea.hbm %s3885_s25, 512 }
 0x366   : > { %p3018_p10 = scmp.ne.s32.totalorder %s3730_s17, %s3017_s14  ;;  %p3022_p8 = scmp.lt.u32.totalorder %s3730_s17, %s3885_s25 }
 0x367   : > { %p3023_p12 = scmp.lt.u32.totalorder %s3021_s24, %s3017_s14  ;;  %p3025_p4 = scmp.lt.u32.totalorder %s3017_s14, %s3730_s17 }
 0x368   : > { %p3019_p0 = pnand %p3018_p10, %p3883_p7 }
 0x369   : > { %p3024_p5 = por %p3023_p12, %p3022_p8 }
 0x36a   : > { %p3020_p1 = pneg %p3019_p0 }
 0x36b   : > { %p3026_p9 = por %p3025_p4, %p3024_p5 }
 0x36d   : > { %p3027_p11 = pnand %p3026_p9, %p3020_p1 }
 0x36f   : > { %3030 = shalt.err (!%p3027_p11)
}
 0x370   : > { %2583 = dma.vmem_to_hbm [thread:$0]  (%p3883_p7), %s3724_s16, 256, %s3730_s17, %s3734_s6, %s3110_s15, %s3110_s15, %s3111_s20  }
 0x371 PF: > { %s3886_s8 = sld [smem:[#allocation31_spill]]  ;;  %s3887_s11 = sld [smem:[#allocation37_spill]] }
 0x372   : > { %p3889_p3 = scmp.ge.s32.totalorder %s3093_s21, 2 }
 0x377   : > { %s1688_s23 = sand.u32 1, %s3886_s8   ;;  %p3888_p6 = scmp.ne.s32.totalorder %s3887_s11, 0 }
 0x378   : > { %s1689_s4 = scalar_lea.sflag [#allocation6], %s1688_s23 }
 0x379   : > { %p2619_p2 = pnand %p3889_p3, %p3888_p6 }
 0x37b   : > { %3072 = dma.done.wait (!%p2619_p2), %s1689_s4, 256  }
 0x37c   : > { %3074 = vsyncadd (!%p2619_p2), %s1689_s4, 4294967040  ;;  %s3890_s22 = sadd.s32 4294967294, %s3093_s21  }
 0x37d   : > { %s1697_s30 = sand.u32 1, %s3890_s22  }
 0x37e   : > { %s1698_s29 = scalar_lea.sflag [#allocation21], %s1697_s30 }
 0x37f   : > { %3076 = dma.done.wait (!%p2619_p2), %s1698_s29, 512  }
 0x380   : > { %3078 = vsyncadd (!%p2619_p2), %s1698_s29, 4294966784  ;;  %s3891_s21 = sld [smem:[#allocation33_spill]]  ;;  %s3892_s15 = sld [smem:[#allocation32_spill]] }
 0x381   : > { %s3893_s20 = sld [smem:[#allocation34_spill]]  ;;  %s3894_s18 = smov %s3085_s19 }
 0x386   : > { %p38_p7 = scmp.ge.s32.totalorder %s3891_s21, 4   ;;  %s3895_s19 = smov %s3892_s15 }
 0x388   :  { %40 = sbr.rel (!%p38_p7) target bundleno = 25 (0x19), region = 202 }
 0x38f   :  { %1712 = vsyncpa [#allocation5], 1 }
 0x390   :  { %1714 = vsyncpa [#allocation5 + $0x1], 1 }
 0x391   :  { %1715 = vsyncpa [#allocation8], 1 }
 0x392   :  { %1717 = vsyncpa [#allocation8 + $0x1], 1 }
 0x393   :  { %1718 = vsyncpa [#allocation11], 1 }
 0x394   :  { %1720 = vsyncpa [#allocation11 + $0x1], 1 }
 0x395   :  { %1721 = vsyncpa [#allocation14], 1 }
 0x396   :  { %1722 = vsyncpa [#allocation17], 1 }
 0x397   :  { %1723 = vsyncpa [#allocation6], 1 }
 0x398   :  { %1725 = vsyncpa [#allocation6 + $0x1], 1 }
 0x399   :  { %1726 = vsyncpa [#allocation21], 1 }
 0x39a   :  { %1728 = vsyncpa [#allocation21 + $0x1], 1 }

</bundles_post_ra>
